<compile_context>
chip_gen: v5e
topology: v5e:2x2
jax: 0.10.0
libtpu: 0.0.40
codegen_flags: <defaults>
</compile_context>

<pallas_src>
import math

import jax
import jax.numpy as jnp
from jax import lax
from jax.experimental import pallas as pl
from jax.experimental.pallas import tpu as pltpu

# Python-float constants only (never closure-captured jax arrays).
_PI4 = math.pi / 4.0
_NAN = float("nan")


def _round_up(x, m):
    return ((x + m - 1) // m) * m


def _make_kernel(H, W, K):
    """Builds the per-batch-element kernel for fixed (H, W, K)."""

    def kernel(s_ref, w_ref, b_ref, theta_ref, alpha_ref, pad_ref):
        # s_ref block: (1, H+2, W+2) -- input plane with a 1-pixel zero ring.
        sp = s_ref[0]                                            # (H+2, W+2)

        # ---- Sobel gradient, separable [1,2,1]^T (rows) x [-1,0,1] (cols).
        # kernel_x == kernel_y in the PyTorch module => grad_x == grad_y == g,
        # so it is computed once.
        v = sp[0:H, :] + 2.0 * sp[1:H + 1, :] + sp[2:H + 2, :]   # (H, W+2)
        g = v[:, 2:W + 2] - v[:, 0:W]                            # (H, W)

        # theta = atan(grad_x / grad_y) with grad_x == grad_y:
        #   g != 0 -> atan(1) = pi/4 ;  g == 0 -> 0/0 -> NaN.
        # compare+select instead of an f32 divide (perf review item 1).
        theta = jnp.where(g == 0.0, _NAN, _PI4).astype(jnp.float32)
        theta_ref[0, 0] = theta                                  # exact-size store

        # ---- Re-embed theta with the zero halo the soft-assignment
        # Conv2d(padding=1) needs (NaNs inside the image propagate, as in the
        # reference; the halo ring itself is always zero).
        pad_ref[...] = jnp.zeros((H + 2, W + 2), jnp.float32)
        pad_ref[1:H + 1, 1:W + 1] = theta
        tp = pad_ref[...]                                        # (H+2, W+2)

        # 9 shifted taps shared by all K output channels.
        taps = [tp[di:di + H, dj:dj + W] for di in range(3) for dj in range(3)]

        # ---- 1 -> K 3x3 conv + channel softmax, single pass with live planes
        # (alpha_ref is written exactly once per channel; bias is a scalar add
        # at the end -- perf review items 5/6/8).
        logits = []
        for oc in range(K):
            acc = w_ref[oc, 0] * taps[0]
            for t in range(1, 9):
                acc = acc + w_ref[oc, t] * taps[t]
            logits.append(acc + b_ref[oc])

        m = logits[0]
        for oc in range(1, K):
            m = jnp.maximum(m, logits[oc])

        exps = [jnp.exp(l - m) for l in logits]                  # EUP
        denom = exps[0]
        for oc in range(1, K):
            denom = denom + exps[oc]

        inv = 1.0 / denom                                        # one divide / pixel
        for oc in range(K):
            alpha_ref[0, oc] = exps[oc] * inv

    return kernel


def directional_gradient_net(s, conv_w, conv_b):
    """Forward pass of DirectionalGradientNet.

    s:       (N, 1, H, W) float32
    conv_w:  (K, 1, 3, 3) float32   (soft-assignment Conv2d weight)
    conv_b:  (K,) float32           (soft-assignment Conv2d bias)
    Returns (theta, alpha) with shapes (N, 1, H, W) and (N, K, H, W).
    """
    N, C, H, W = s.shape
    assert C == 1, "DirectionalGradientNet expects a single-channel input"
    K = conv_w.shape[0]

    # 1-pixel zero ring == the zero halo both padding=1 convolutions need.
    sp = jnp.pad(s[:, 0].astype(jnp.float32), ((0, 0), (1, 1), (1, 1)))

    w_flat = conv_w.reshape(K, 9).astype(jnp.float32)
    b = conv_b.astype(jnp.float32)

    kernel = _make_kernel(H, W, K)

    # VMEM budget: double-buffered input/output blocks + halo scratch + the
    # ~(9 taps + K logits + K exps) live (H, W) planes, clamped to the
    # per-generation capacity (v7x only has 64 MiB physical VMEM).
    lane_plane = _round_up(H, 8) * _round_up(W, 128) * 4
    need = (2 * (H + 2) * (W + 2) * 4            # input block, double buffered
            + 2 * (K + 1) * H * W * 4            # output blocks, double buffered
            + (H + 2) * (W + 2) * 4              # halo scratch
            + (12 + 2 * K) * lane_plane)         # live temporaries
    try:
        cap = pltpu.get_tpu_info().vmem_capacity_bytes - (8 << 20)
        cap = min(cap, 100 << 20)
    except Exception:
        cap = 56 << 20                           # safe on v5e / v6e / v7x
    vmem_limit = int(min(max(32 << 20, 2 * need), cap))

    theta, alpha = pl.pallas_call(
        kernel,
        out_shape=(
            jax.ShapeDtypeStruct((N, 1, H, W), jnp.float32),
            jax.ShapeDtypeStruct((N, K, H, W), jnp.float32),
        ),
        grid=(N,),
        in_specs=[
            pl.BlockSpec((1, H + 2, W + 2), lambda n: (n, 0, 0)),
            pl.BlockSpec(memory_space=pltpu.MemorySpace.SMEM),   # conv weights (K, 9)
            pl.BlockSpec(memory_space=pltpu.MemorySpace.SMEM),   # conv bias (K,)
        ],
        out_specs=(
            pl.BlockSpec((1, 1, H, W), lambda n: (n, 0, 0, 0)),
            pl.BlockSpec((1, K, H, W), lambda n: (n, 0, 0, 0)),
        ),
        scratch_shapes=[pltpu.VMEM((H + 2, W + 2), jnp.float32)],  # theta + zero halo
        compiler_params=pltpu.CompilerParams(
            dimension_semantics=("parallel",),
            vmem_limit_bytes=vmem_limit,
        ),
    )(sp, w_flat, b)

    return theta, alpha


# ----------------------------------------------------------------------------
# pure-JAX reference for the correctness check
# ----------------------------------------------------------------------------
def _reference(s, conv_w, conv_b):
    kx = jnp.array([[-1.0, 0.0, 1.0],
                    [-2.0, 0.0, 2.0],
                    [-1.0, 0.0, 1.0]], jnp.float32).reshape(1, 1, 3, 3)
    hp = jax.lax.Precision.HIGHEST
    gx = lax.conv_general_dilated(s, kx, (1, 1), ((1, 1), (1, 1)), precision=hp)
    gy = lax.conv_general_dilated(s, kx, (1, 1), ((1, 1), (1, 1)), precision=hp)
    theta = jnp.arctan(gx / gy)
    logits = lax.conv_general_dilated(theta, conv_w, (1, 1), ((1, 1), (1, 1)),
                                      precision=hp)
    logits = logits + conv_b[None, :, None, None]
    alpha = jax.nn.softmax(logits, axis=1)     # nn.Softmax() on 4D input -> dim=1
    return theta, alpha


if __name__ == "__main__":
    N, H, W, K = 2, 16, 16, 4

    key = jax.random.PRNGKey(0)
    k_s, k_w, k_b = jax.random.split(key, 3)
    s = jax.random.normal(k_s, (N, 1, H, W), dtype=jnp.float32)
    # deterministic Conv2d(1, K, 3) init (PyTorch-style uniform(-1/3, 1/3))
    bound = 1.0 / 3.0
    conv_w = jax.random.uniform(k_w, (K, 1, 3, 3), jnp.float32, -bound, bound)
    conv_b = jax.random.uniform(k_b, (K,), jnp.float32, -bound, bound)

    theta, alpha = directional_gradient_net(s, conv_w, conv_b)
    jax.block_until_ready((theta, alpha))

    theta_ref, alpha_ref = _reference(s, conv_w, conv_b)
    assert theta.shape == (N, 1, H, W) and alpha.shape == (N, K, H, W)
    assert jnp.allclose(jnp.nan_to_num(theta), jnp.nan_to_num(theta_ref),
                        atol=1e-4, rtol=1e-4)
    assert jnp.allclose(jnp.nan_to_num(alpha), jnp.nan_to_num(alpha_ref),
                        atol=1e-3, rtol=1e-3)

    print("KERNEL_OK")
</pallas_src>

<mosaic_0001>
module attributes {stable_mosaic.version = 11 : i64} {
  func.func @kernel(%arg0: i32, %arg1: memref<1x18x18xf32, #tpu.memory_space<vmem>>, %arg2: memref<4x9xf32, #tpu.memory_space<smem>>, %arg3: memref<4xf32, #tpu.memory_space<smem>>, %arg4: memref<1x1x16x16xf32, #tpu.memory_space<vmem>>, %arg5: memref<1x4x16x16xf32, #tpu.memory_space<vmem>>, %arg6: memref<18x18xf32, #tpu.memory_space<vmem>>) attributes {dimension_semantics = [#tpu.dimension_semantics<parallel>], iteration_bounds = array<i64: 2>, scalar_prefetch = 0 : i64, scratch_operands = 1 : i64, tpu.core_type = #tpu.core_type<tc>, window_params = [{transform_indices = @transform_0, window_bounds = array<i64: 1, 18, 18>}, {transform_indices = @transform_1, window_bounds = array<i64: 4, 9>}, {transform_indices = @transform_2, window_bounds = array<i64: 4>}, {transform_indices = @transform_3, window_bounds = array<i64: 1, 1, 16, 16>}, {transform_indices = @transform_4, window_bounds = array<i64: 1, 4, 16, 16>}]} {
    %c0 = arith.constant 0 : index
    %c0_0 = arith.constant 0 : index
    %c0_1 = arith.constant 0 : index
    %0 = vector.load %arg1[%c0, %c0_0, %c0_1] : memref<1x18x18xf32, #tpu.memory_space<vmem>>, vector<1x18x18xf32>
    %1 = vector.shape_cast %0 : vector<1x18x18xf32> to vector<18x18xf32>
    %2 = vector.extract_strided_slice %1 {offsets = [0, 0], sizes = [16, 18], strides = [1, 1]} : vector<18x18xf32> to vector<16x18xf32>
    %3 = vector.extract_strided_slice %1 {offsets = [1, 0], sizes = [16, 18], strides = [1, 1]} : vector<18x18xf32> to vector<16x18xf32>
    %cst = arith.constant 2.000000e+00 : f32
    %4 = vector.broadcast %cst : f32 to vector<16x18xf32>
    %5 = arith.mulf %4, %3 : vector<16x18xf32>
    %6 = arith.addf %2, %5 : vector<16x18xf32>
    %7 = vector.extract_strided_slice %1 {offsets = [2, 0], sizes = [16, 18], strides = [1, 1]} : vector<18x18xf32> to vector<16x18xf32>
    %8 = arith.addf %6, %7 : vector<16x18xf32>
    %9 = vector.extract_strided_slice %8 {offsets = [0, 2], sizes = [16, 16], strides = [1, 1]} : vector<16x18xf32> to vector<16x16xf32>
    %10 = vector.extract_strided_slice %8 {offsets = [0, 0], sizes = [16, 16], strides = [1, 1]} : vector<16x18xf32> to vector<16x16xf32>
    %11 = arith.subf %9, %10 : vector<16x16xf32>
    %cst_2 = arith.constant 0.000000e+00 : f32
    %12 = vector.broadcast %cst_2 : f32 to vector<16x16xf32>
    %13 = arith.cmpf oeq, %11, %12 : vector<16x16xf32>
    %cst_3 = arith.constant 0x7FC00000 : f32
    %cst_4 = arith.constant 0.785398185 : f32
    %14 = vector.broadcast %cst_3 : f32 to vector<16x16xf32>
    %15 = vector.broadcast %cst_4 : f32 to vector<16x16xf32>
    %16 = arith.select %13, %14, %15 : vector<16x16xi1>, vector<16x16xf32>
    %c0_5 = arith.constant 0 : index
    %c0_6 = arith.constant 0 : index
    %c0_7 = arith.constant 0 : index
    %c0_8 = arith.constant 0 : index
    %17 = vector.load %arg4[%c0_5, %c0_6, %c0_7, %c0_8] : memref<1x1x16x16xf32, #tpu.memory_space<vmem>>, vector<1x1x16x16xf32>
    %18 = vector.shape_cast %17 : vector<1x1x16x16xf32> to vector<16x16xf32>
    %19 = vector.shape_cast %16 : vector<16x16xf32> to vector<1x1x16x16xf32>
    tpu.vector_store %arg4[%c0_5, %c0_6, %c0_7, %c0_8], %19 {strides = array<i32>} : memref<1x1x16x16xf32, #tpu.memory_space<vmem>>, vector<1x1x16x16xf32>,
    %cst_9 = arith.constant 0.000000e+00 : f32
    %20 = vector.broadcast %cst_9 : f32 to vector<18x18xf32>
    %c0_10 = arith.constant 0 : index
    %c0_11 = arith.constant 0 : index
    %21 = vector.load %arg6[%c0_10, %c0_11] : memref<18x18xf32, #tpu.memory_space<vmem>>, vector<18x18xf32>
    tpu.vector_store %arg6[%c0_10, %c0_11], %20 {strides = array<i32>} : memref<18x18xf32, #tpu.memory_space<vmem>>, vector<18x18xf32>,
    %c1 = arith.constant 1 : index
    %c1_12 = arith.constant 1 : index
    %22 = vector.load %arg6[%c1, %c1_12] : memref<18x18xf32, #tpu.memory_space<vmem>>, vector<16x16xf32>
    tpu.vector_store %arg6[%c1, %c1_12], %16 {strides = array<i32>} : memref<18x18xf32, #tpu.memory_space<vmem>>, vector<16x16xf32>,
    %c0_13 = arith.constant 0 : index
    %c0_14 = arith.constant 0 : index
    %23 = vector.load %arg6[%c0_13, %c0_14] : memref<18x18xf32, #tpu.memory_space<vmem>>, vector<18x18xf32>
    %24 = vector.extract_strided_slice %23 {offsets = [0, 0], sizes = [16, 16], strides = [1, 1]} : vector<18x18xf32> to vector<16x16xf32>
    %25 = vector.extract_strided_slice %23 {offsets = [0, 1], sizes = [16, 16], strides = [1, 1]} : vector<18x18xf32> to vector<16x16xf32>
    %26 = vector.extract_strided_slice %23 {offsets = [0, 2], sizes = [16, 16], strides = [1, 1]} : vector<18x18xf32> to vector<16x16xf32>
    %27 = vector.extract_strided_slice %23 {offsets = [1, 0], sizes = [16, 16], strides = [1, 1]} : vector<18x18xf32> to vector<16x16xf32>
    %28 = vector.extract_strided_slice %23 {offsets = [1, 1], sizes = [16, 16], strides = [1, 1]} : vector<18x18xf32> to vector<16x16xf32>
    %29 = vector.extract_strided_slice %23 {offsets = [1, 2], sizes = [16, 16], strides = [1, 1]} : vector<18x18xf32> to vector<16x16xf32>
    %30 = vector.extract_strided_slice %23 {offsets = [2, 0], sizes = [16, 16], strides = [1, 1]} : vector<18x18xf32> to vector<16x16xf32>
    %31 = vector.extract_strided_slice %23 {offsets = [2, 1], sizes = [16, 16], strides = [1, 1]} : vector<18x18xf32> to vector<16x16xf32>
    %32 = vector.extract_strided_slice %23 {offsets = [2, 2], sizes = [16, 16], strides = [1, 1]} : vector<18x18xf32> to vector<16x16xf32>
    %c0_15 = arith.constant 0 : index
    %c0_16 = arith.constant 0 : index
    %33 = memref.load %arg2[%c0_15, %c0_16] : memref<4x9xf32, #tpu.memory_space<smem>>
    %34 = vector.broadcast %33 : f32 to vector<16x16xf32>
    %35 = arith.mulf %34, %24 : vector<16x16xf32>
    %c0_17 = arith.constant 0 : index
    %c1_18 = arith.constant 1 : index
    %36 = memref.load %arg2[%c0_17, %c1_18] : memref<4x9xf32, #tpu.memory_space<smem>>
    %37 = vector.broadcast %36 : f32 to vector<16x16xf32>
    %38 = arith.mulf %37, %25 : vector<16x16xf32>
    %39 = arith.addf %35, %38 : vector<16x16xf32>
    %c0_19 = arith.constant 0 : index
    %c2 = arith.constant 2 : index
    %40 = memref.load %arg2[%c0_19, %c2] : memref<4x9xf32, #tpu.memory_space<smem>>
    %41 = vector.broadcast %40 : f32 to vector<16x16xf32>
    %42 = arith.mulf %41, %26 : vector<16x16xf32>
    %43 = arith.addf %39, %42 : vector<16x16xf32>
    %c0_20 = arith.constant 0 : index
    %c3 = arith.constant 3 : index
    %44 = memref.load %arg2[%c0_20, %c3] : memref<4x9xf32, #tpu.memory_space<smem>>
    %45 = vector.broadcast %44 : f32 to vector<16x16xf32>
    %46 = arith.mulf %45, %27 : vector<16x16xf32>
    %47 = arith.addf %43, %46 : vector<16x16xf32>
    %c0_21 = arith.constant 0 : index
    %c4 = arith.constant 4 : index
    %48 = memref.load %arg2[%c0_21, %c4] : memref<4x9xf32, #tpu.memory_space<smem>>
    %49 = vector.broadcast %48 : f32 to vector<16x16xf32>
    %50 = arith.mulf %49, %28 : vector<16x16xf32>
    %51 = arith.addf %47, %50 : vector<16x16xf32>
    %c0_22 = arith.constant 0 : index
    %c5 = arith.constant 5 : index
    %52 = memref.load %arg2[%c0_22, %c5] : memref<4x9xf32, #tpu.memory_space<smem>>
    %53 = vector.broadcast %52 : f32 to vector<16x16xf32>
    %54 = arith.mulf %53, %29 : vector<16x16xf32>
    %55 = arith.addf %51, %54 : vector<16x16xf32>
    %c0_23 = arith.constant 0 : index
    %c6 = arith.constant 6 : index
    %56 = memref.load %arg2[%c0_23, %c6] : memref<4x9xf32, #tpu.memory_space<smem>>
    %57 = vector.broadcast %56 : f32 to vector<16x16xf32>
    %58 = arith.mulf %57, %30 : vector<16x16xf32>
    %59 = arith.addf %55, %58 : vector<16x16xf32>
    %c0_24 = arith.constant 0 : index
    %c7 = arith.constant 7 : index
    %60 = memref.load %arg2[%c0_24, %c7] : memref<4x9xf32, #tpu.memory_space<smem>>
    %61 = vector.broadcast %60 : f32 to vector<16x16xf32>
    %62 = arith.mulf %61, %31 : vector<16x16xf32>
    %63 = arith.addf %59, %62 : vector<16x16xf32>
    %c0_25 = arith.constant 0 : index
    %c8 = arith.constant 8 : index
    %64 = memref.load %arg2[%c0_25, %c8] : memref<4x9xf32, #tpu.memory_space<smem>>
    %65 = vector.broadcast %64 : f32 to vector<16x16xf32>
    %66 = arith.mulf %65, %32 : vector<16x16xf32>
    %67 = arith.addf %63, %66 : vector<16x16xf32>
    %c0_26 = arith.constant 0 : index
    %68 = memref.load %arg3[%c0_26] : memref<4xf32, #tpu.memory_space<smem>>
    %69 = vector.broadcast %68 : f32 to vector<16x16xf32>
    %70 = arith.addf %67, %69 : vector<16x16xf32>
    %c1_27 = arith.constant 1 : index
    %c0_28 = arith.constant 0 : index
    %71 = memref.load %arg2[%c1_27, %c0_28] : memref<4x9xf32, #tpu.memory_space<smem>>
    %72 = vector.broadcast %71 : f32 to vector<16x16xf32>
    %73 = arith.mulf %72, %24 : vector<16x16xf32>
    %c1_29 = arith.constant 1 : index
    %c1_30 = arith.constant 1 : index
    %74 = memref.load %arg2[%c1_29, %c1_30] : memref<4x9xf32, #tpu.memory_space<smem>>
    %75 = vector.broadcast %74 : f32 to vector<16x16xf32>
    %76 = arith.mulf %75, %25 : vector<16x16xf32>
    %77 = arith.addf %73, %76 : vector<16x16xf32>
    %c1_31 = arith.constant 1 : index
    %c2_32 = arith.constant 2 : index
    %78 = memref.load %arg2[%c1_31, %c2_32] : memref<4x9xf32, #tpu.memory_space<smem>>
    %79 = vector.broadcast %78 : f32 to vector<16x16xf32>
    %80 = arith.mulf %79, %26 : vector<16x16xf32>
    %81 = arith.addf %77, %80 : vector<16x16xf32>
    %c1_33 = arith.constant 1 : index
    %c3_34 = arith.constant 3 : index
    %82 = memref.load %arg2[%c1_33, %c3_34] : memref<4x9xf32, #tpu.memory_space<smem>>
    %83 = vector.broadcast %82 : f32 to vector<16x16xf32>
    %84 = arith.mulf %83, %27 : vector<16x16xf32>
    %85 = arith.addf %81, %84 : vector<16x16xf32>
    %c1_35 = arith.constant 1 : index
    %c4_36 = arith.constant 4 : index
    %86 = memref.load %arg2[%c1_35, %c4_36] : memref<4x9xf32, #tpu.memory_space<smem>>
    %87 = vector.broadcast %86 : f32 to vector<16x16xf32>
    %88 = arith.mulf %87, %28 : vector<16x16xf32>
    %89 = arith.addf %85, %88 : vector<16x16xf32>
    %c1_37 = arith.constant 1 : index
    %c5_38 = arith.constant 5 : index
    %90 = memref.load %arg2[%c1_37, %c5_38] : memref<4x9xf32, #tpu.memory_space<smem>>
    %91 = vector.broadcast %90 : f32 to vector<16x16xf32>
    %92 = arith.mulf %91, %29 : vector<16x16xf32>
    %93 = arith.addf %89, %92 : vector<16x16xf32>
    %c1_39 = arith.constant 1 : index
    %c6_40 = arith.constant 6 : index
    %94 = memref.load %arg2[%c1_39, %c6_40] : memref<4x9xf32, #tpu.memory_space<smem>>
    %95 = vector.broadcast %94 : f32 to vector<16x16xf32>
    %96 = arith.mulf %95, %30 : vector<16x16xf32>
    %97 = arith.addf %93, %96 : vector<16x16xf32>
    %c1_41 = arith.constant 1 : index
    %c7_42 = arith.constant 7 : index
    %98 = memref.load %arg2[%c1_41, %c7_42] : memref<4x9xf32, #tpu.memory_space<smem>>
    %99 = vector.broadcast %98 : f32 to vector<16x16xf32>
    %100 = arith.mulf %99, %31 : vector<16x16xf32>
    %101 = arith.addf %97, %100 : vector<16x16xf32>
    %c1_43 = arith.constant 1 : index
    %c8_44 = arith.constant 8 : index
    %102 = memref.load %arg2[%c1_43, %c8_44] : memref<4x9xf32, #tpu.memory_space<smem>>
    %103 = vector.broadcast %102 : f32 to vector<16x16xf32>
    %104 = arith.mulf %103, %32 : vector<16x16xf32>
    %105 = arith.addf %101, %104 : vector<16x16xf32>
    %c1_45 = arith.constant 1 : index
    %106 = memref.load %arg3[%c1_45] : memref<4xf32, #tpu.memory_space<smem>>
    %107 = vector.broadcast %106 : f32 to vector<16x16xf32>
    %108 = arith.addf %105, %107 : vector<16x16xf32>
    %c2_46 = arith.constant 2 : index
    %c0_47 = arith.constant 0 : index
    %109 = memref.load %arg2[%c2_46, %c0_47] : memref<4x9xf32, #tpu.memory_space<smem>>
    %110 = vector.broadcast %109 : f32 to vector<16x16xf32>
    %111 = arith.mulf %110, %24 : vector<16x16xf32>
    %c2_48 = arith.constant 2 : index
    %c1_49 = arith.constant 1 : index
    %112 = memref.load %arg2[%c2_48, %c1_49] : memref<4x9xf32, #tpu.memory_space<smem>>
    %113 = vector.broadcast %112 : f32 to vector<16x16xf32>
    %114 = arith.mulf %113, %25 : vector<16x16xf32>
    %115 = arith.addf %111, %114 : vector<16x16xf32>
    %c2_50 = arith.constant 2 : index
    %c2_51 = arith.constant 2 : index
    %116 = memref.load %arg2[%c2_50, %c2_51] : memref<4x9xf32, #tpu.memory_space<smem>>
    %117 = vector.broadcast %116 : f32 to vector<16x16xf32>
    %118 = arith.mulf %117, %26 : vector<16x16xf32>
    %119 = arith.addf %115, %118 : vector<16x16xf32>
    %c2_52 = arith.constant 2 : index
    %c3_53 = arith.constant 3 : index
    %120 = memref.load %arg2[%c2_52, %c3_53] : memref<4x9xf32, #tpu.memory_space<smem>>
    %121 = vector.broadcast %120 : f32 to vector<16x16xf32>
    %122 = arith.mulf %121, %27 : vector<16x16xf32>
    %123 = arith.addf %119, %122 : vector<16x16xf32>
    %c2_54 = arith.constant 2 : index
    %c4_55 = arith.constant 4 : index
    %124 = memref.load %arg2[%c2_54, %c4_55] : memref<4x9xf32, #tpu.memory_space<smem>>
    %125 = vector.broadcast %124 : f32 to vector<16x16xf32>
    %126 = arith.mulf %125, %28 : vector<16x16xf32>
    %127 = arith.addf %123, %126 : vector<16x16xf32>
    %c2_56 = arith.constant 2 : index
    %c5_57 = arith.constant 5 : index
    %128 = memref.load %arg2[%c2_56, %c5_57] : memref<4x9xf32, #tpu.memory_space<smem>>
    %129 = vector.broadcast %128 : f32 to vector<16x16xf32>
    %130 = arith.mulf %129, %29 : vector<16x16xf32>
    %131 = arith.addf %127, %130 : vector<16x16xf32>
    %c2_58 = arith.constant 2 : index
    %c6_59 = arith.constant 6 : index
    %132 = memref.load %arg2[%c2_58, %c6_59] : memref<4x9xf32, #tpu.memory_space<smem>>
    %133 = vector.broadcast %132 : f32 to vector<16x16xf32>
    %134 = arith.mulf %133, %30 : vector<16x16xf32>
    %135 = arith.addf %131, %134 : vector<16x16xf32>
    %c2_60 = arith.constant 2 : index
    %c7_61 = arith.constant 7 : index
    %136 = memref.load %arg2[%c2_60, %c7_61] : memref<4x9xf32, #tpu.memory_space<smem>>
    %137 = vector.broadcast %136 : f32 to vector<16x16xf32>
    %138 = arith.mulf %137, %31 : vector<16x16xf32>
    %139 = arith.addf %135, %138 : vector<16x16xf32>
    %c2_62 = arith.constant 2 : index
    %c8_63 = arith.constant 8 : index
    %140 = memref.load %arg2[%c2_62, %c8_63] : memref<4x9xf32, #tpu.memory_space<smem>>
    %141 = vector.broadcast %140 : f32 to vector<16x16xf32>
    %142 = arith.mulf %141, %32 : vector<16x16xf32>
    %143 = arith.addf %139, %142 : vector<16x16xf32>
    %c2_64 = arith.constant 2 : index
    %144 = memref.load %arg3[%c2_64] : memref<4xf32, #tpu.memory_space<smem>>
    %145 = vector.broadcast %144 : f32 to vector<16x16xf32>
    %146 = arith.addf %143, %145 : vector<16x16xf32>
    %c3_65 = arith.constant 3 : index
    %c0_66 = arith.constant 0 : index
    %147 = memref.load %arg2[%c3_65, %c0_66] : memref<4x9xf32, #tpu.memory_space<smem>>
    %148 = vector.broadcast %147 : f32 to vector<16x16xf32>
    %149 = arith.mulf %148, %24 : vector<16x16xf32>
    %c3_67 = arith.constant 3 : index
    %c1_68 = arith.constant 1 : index
    %150 = memref.load %arg2[%c3_67, %c1_68] : memref<4x9xf32, #tpu.memory_space<smem>>
    %151 = vector.broadcast %150 : f32 to vector<16x16xf32>
    %152 = arith.mulf %151, %25 : vector<16x16xf32>
    %153 = arith.addf %149, %152 : vector<16x16xf32>
    %c3_69 = arith.constant 3 : index
    %c2_70 = arith.constant 2 : index
    %154 = memref.load %arg2[%c3_69, %c2_70] : memref<4x9xf32, #tpu.memory_space<smem>>
    %155 = vector.broadcast %154 : f32 to vector<16x16xf32>
    %156 = arith.mulf %155, %26 : vector<16x16xf32>
    %157 = arith.addf %153, %156 : vector<16x16xf32>
    %c3_71 = arith.constant 3 : index
    %c3_72 = arith.constant 3 : index
    %158 = memref.load %arg2[%c3_71, %c3_72] : memref<4x9xf32, #tpu.memory_space<smem>>
    %159 = vector.broadcast %158 : f32 to vector<16x16xf32>
    %160 = arith.mulf %159, %27 : vector<16x16xf32>
    %161 = arith.addf %157, %160 : vector<16x16xf32>
    %c3_73 = arith.constant 3 : index
    %c4_74 = arith.constant 4 : index
    %162 = memref.load %arg2[%c3_73, %c4_74] : memref<4x9xf32, #tpu.memory_space<smem>>
    %163 = vector.broadcast %162 : f32 to vector<16x16xf32>
    %164 = arith.mulf %163, %28 : vector<16x16xf32>
    %165 = arith.addf %161, %164 : vector<16x16xf32>
    %c3_75 = arith.constant 3 : index
    %c5_76 = arith.constant 5 : index
    %166 = memref.load %arg2[%c3_75, %c5_76] : memref<4x9xf32, #tpu.memory_space<smem>>
    %167 = vector.broadcast %166 : f32 to vector<16x16xf32>
    %168 = arith.mulf %167, %29 : vector<16x16xf32>
    %169 = arith.addf %165, %168 : vector<16x16xf32>
    %c3_77 = arith.constant 3 : index
    %c6_78 = arith.constant 6 : index
    %170 = memref.load %arg2[%c3_77, %c6_78] : memref<4x9xf32, #tpu.memory_space<smem>>
    %171 = vector.broadcast %170 : f32 to vector<16x16xf32>
    %172 = arith.mulf %171, %30 : vector<16x16xf32>
    %173 = arith.addf %169, %172 : vector<16x16xf32>
    %c3_79 = arith.constant 3 : index
    %c7_80 = arith.constant 7 : index
    %174 = memref.load %arg2[%c3_79, %c7_80] : memref<4x9xf32, #tpu.memory_space<smem>>
    %175 = vector.broadcast %174 : f32 to vector<16x16xf32>
    %176 = arith.mulf %175, %31 : vector<16x16xf32>
    %177 = arith.addf %173, %176 : vector<16x16xf32>
    %c3_81 = arith.constant 3 : index
    %c8_82 = arith.constant 8 : index
    %178 = memref.load %arg2[%c3_81, %c8_82] : memref<4x9xf32, #tpu.memory_space<smem>>
    %179 = vector.broadcast %178 : f32 to vector<16x16xf32>
    %180 = arith.mulf %179, %32 : vector<16x16xf32>
    %181 = arith.addf %177, %180 : vector<16x16xf32>
    %c3_83 = arith.constant 3 : index
    %182 = memref.load %arg3[%c3_83] : memref<4xf32, #tpu.memory_space<smem>>
    %183 = vector.broadcast %182 : f32 to vector<16x16xf32>
    %184 = arith.addf %181, %183 : vector<16x16xf32>
    %185 = arith.maximumf %70, %108 : vector<16x16xf32>
    %186 = arith.maximumf %185, %146 : vector<16x16xf32>
    %187 = arith.maximumf %186, %184 : vector<16x16xf32>
    %188 = arith.subf %70, %187 : vector<16x16xf32>
    %189 = math.exp %188 : vector<16x16xf32>
    %190 = arith.subf %108, %187 : vector<16x16xf32>
    %191 = math.exp %190 : vector<16x16xf32>
    %192 = arith.subf %146, %187 : vector<16x16xf32>
    %193 = math.exp %192 : vector<16x16xf32>
    %194 = arith.subf %184, %187 : vector<16x16xf32>
    %195 = math.exp %194 : vector<16x16xf32>
    %196 = arith.addf %189, %191 : vector<16x16xf32>
    %197 = arith.addf %196, %193 : vector<16x16xf32>
    %198 = arith.addf %197, %195 : vector<16x16xf32>
    %cst_84 = arith.constant 1.000000e+00 : f32
    %199 = vector.broadcast %cst_84 : f32 to vector<16x16xf32>
    %200 = arith.divf %199, %198 : vector<16x16xf32>
    %201 = arith.mulf %189, %200 : vector<16x16xf32>
    %c0_85 = arith.constant 0 : index
    %c0_86 = arith.constant 0 : index
    %c0_87 = arith.constant 0 : index
    %c0_88 = arith.constant 0 : index
    %202 = vector.load %arg5[%c0_85, %c0_86, %c0_87, %c0_88] : memref<1x4x16x16xf32, #tpu.memory_space<vmem>>, vector<1x1x16x16xf32>
    %203 = vector.shape_cast %202 : vector<1x1x16x16xf32> to vector<16x16xf32>
    %204 = vector.shape_cast %201 : vector<16x16xf32> to vector<1x1x16x16xf32>
    tpu.vector_store %arg5[%c0_85, %c0_86, %c0_87, %c0_88], %204 {strides = array<i32>} : memref<1x4x16x16xf32, #tpu.memory_space<vmem>>, vector<1x1x16x16xf32>,
    %205 = arith.mulf %191, %200 : vector<16x16xf32>
    %c0_89 = arith.constant 0 : index
    %c1_90 = arith.constant 1 : index
    %c0_91 = arith.constant 0 : index
    %c0_92 = arith.constant 0 : index
    %206 = vector.load %arg5[%c0_89, %c1_90, %c0_91, %c0_92] : memref<1x4x16x16xf32, #tpu.memory_space<vmem>>, vector<1x1x16x16xf32>
    %207 = vector.shape_cast %206 : vector<1x1x16x16xf32> to vector<16x16xf32>
    %208 = vector.shape_cast %205 : vector<16x16xf32> to vector<1x1x16x16xf32>
    tpu.vector_store %arg5[%c0_89, %c1_90, %c0_91, %c0_92], %208 {strides = array<i32>} : memref<1x4x16x16xf32, #tpu.memory_space<vmem>>, vector<1x1x16x16xf32>,
    %209 = arith.mulf %193, %200 : vector<16x16xf32>
    %c0_93 = arith.constant 0 : index
    %c2_94 = arith.constant 2 : index
    %c0_95 = arith.constant 0 : index
    %c0_96 = arith.constant 0 : index
    %210 = vector.load %arg5[%c0_93, %c2_94, %c0_95, %c0_96] : memref<1x4x16x16xf32, #tpu.memory_space<vmem>>, vector<1x1x16x16xf32>
    %211 = vector.shape_cast %210 : vector<1x1x16x16xf32> to vector<16x16xf32>
    %212 = vector.shape_cast %209 : vector<16x16xf32> to vector<1x1x16x16xf32>
    tpu.vector_store %arg5[%c0_93, %c2_94, %c0_95, %c0_96], %212 {strides = array<i32>} : memref<1x4x16x16xf32, #tpu.memory_space<vmem>>, vector<1x1x16x16xf32>,
    %213 = arith.mulf %195, %200 : vector<16x16xf32>
    %c0_97 = arith.constant 0 : index
    %c3_98 = arith.constant 3 : index
    %c0_99 = arith.constant 0 : index
    %c0_100 = arith.constant 0 : index
    %214 = vector.load %arg5[%c0_97, %c3_98, %c0_99, %c0_100] : memref<1x4x16x16xf32, #tpu.memory_space<vmem>>, vector<1x1x16x16xf32>
    %215 = vector.shape_cast %214 : vector<1x1x16x16xf32> to vector<16x16xf32>
    %216 = vector.shape_cast %213 : vector<16x16xf32> to vector<1x1x16x16xf32>
    tpu.vector_store %arg5[%c0_97, %c3_98, %c0_99, %c0_100], %216 {strides = array<i32>} : memref<1x4x16x16xf32, #tpu.memory_space<vmem>>, vector<1x1x16x16xf32>,
    return
  }
  func.func @transform_0(%arg0: i32) -> (i32, i32, i32) {
    %c0_i32 = arith.constant 0 : i32
    %c0_i32_0 = arith.constant 0 : i32
    %c0_i32_1 = arith.constant 0 : i32
    return %arg0, %c0_i32, %c0_i32_0 : i32, i32, i32
  }
  func.func @transform_1(%arg0: i32) -> (i32, i32) {
    %c0_i32 = arith.constant 0 : i32
    %c0_i32_0 = arith.constant 0 : i32
    %c0_i32_1 = arith.constant 0 : i32
    return %c0_i32, %c0_i32_0 : i32, i32
  }
  func.func @transform_2(%arg0: i32) -> i32 {
    %c0_i32 = arith.constant 0 : i32
    %c0_i32_0 = arith.constant 0 : i32
    return %c0_i32 : i32
  }
  func.func @transform_3(%arg0: i32) -> (i32, i32, i32, i32) {
    %c0_i32 = arith.constant 0 : i32
    %c0_i32_0 = arith.constant 0 : i32
    %c0_i32_1 = arith.constant 0 : i32
    %c0_i32_2 = arith.constant 0 : i32
    return %arg0, %c0_i32, %c0_i32_0, %c0_i32_1 : i32, i32, i32, i32
  }
  func.func @transform_4(%arg0: i32) -> (i32, i32, i32, i32) {
    %c0_i32 = arith.constant 0 : i32
    %c0_i32_0 = arith.constant 0 : i32
    %c0_i32_1 = arith.constant 0 : i32
    %c0_i32_2 = arith.constant 0 : i32
    return %arg0, %c0_i32, %c0_i32_0, %c0_i32_1 : i32, i32, i32, i32
  }
}

</mosaic_0001>

<bundles_post_ra>
// kernel: tpu_custom_call.1
= control target key start
LH: loop header
LB: loop body
LE: loop exit
PB: predicated region body
PF: predicated region fallthrough
CT: control target
= control target key end

     0   :  { %s2215_s0 = inlined_call_operand.vmem [shape: f32[2,18,18], index: 0, kind: input, shape index: {}]   ;;  %s2216_s1 = inlined_call_operand.vmem [shape: f32[4,9], index: 1, kind: input, shape index: {}]   ;;  %s2217_s2 = inlined_call_operand.vmem [shape: f32[4], index: 2, kind: input, shape index: {}]   ;;  %s2218_s3 = inlined_call_operand.hbm [shape: f32[2,1,16,16], index: 3, kind: output, shape index: {0}]   ;;  %s2219_s4 = inlined_call_operand.hbm [shape: f32[2,4,16,16], index: 4, kind: output, shape index: {1}]  }
   0x1   :  { %2234 = sst [smem:[#allocation21_spill]] %s2215_s0 }
   0x2   :  { %2235 = sst [smem:[#allocation22_spill]] %s2216_s1 }
   0x3   :  { %2236 = sst [smem:[#allocation23_spill]] %s2217_s2 }
   0x4   :  { %10 = vsyncpa [#allocation5], 0 }
   0x5   :  { %11 = vsyncpa [#allocation7], 0 }
   0x6   :  { %12 = vsyncpa [#allocation4], 0 }
   0x7   :  { %14 = vsyncpa [#allocation4 + $0x1], 0 }
   0x8   :  { %15 = vsyncpa [#allocation10], 0 }
   0x9   :  { %17 = vsyncpa [#allocation10 + $0x1], 0  ;;  %s1490_s15 = smov 0   ;;  %s1492_s16 = smov 0  }
   0xa   :  { %s1494_s17 = smov 0   ;;  %s1496_s18 = smov 0  }
   0xb LB: > { %2237 = sst [smem:[#allocation15_spill]] %s1442_s15  ;;  %s1511_s19 = sadd.s32 4294967295, %s1454_s18   ;;  %s1454_s18 = sphi %s1496_s18, %s2263_s18   ;;  %s1450_s17 = sphi %s1494_s17, %s2265_s17   ;;  %s1446_s16 = sphi %s1492_s16, %s2267_s16   ;;  %s1442_s15 = sphi %s1490_s15, %s2266_s15  }
   0xc   : > { %2238 = sst [smem:[#allocation16_spill]] %s1450_s17  ;;  %s1164_s20 = sadd.s32 4294967294, %s1454_s18  }
   0xd   : > { %s1515_s21 = sadd.s32 1, %s1454_s18   ;;  %s98_s22 = sadd.s32 1, %s1450_s17 }
   0xe   : > { %2239 = sst [smem:[#allocation17_spill]] %s1515_s21  ;;  %s95_s23 = ssub.s32 %s1454_s18, %s1515_s21 }
   0xf   : > { %p108_p0 = scmp.ne.s32.totalorder %s1450_s17, %s1446_s16  ;;  %p96_p1 = scmp.eq.s32.totalorder %s95_s23, 0 }
  0x10   : > { %p109_p2 = scmp.eq.s32.totalorder %s1511_s19, 1  ;;  %p114_p3 = scmp.ne.s32.totalorder %s1446_s16, %s1442_s15 }
  0x11   : > { %p115_p4 = scmp.eq.s32.totalorder %s1164_s20, 1  ;;  %p1165_p7 = scmp.ge.s32.totalorder %s1454_s18, 1 }
  0x12   : > { %s1526_s24 = scalar_select %p96_p1, %s1450_s17, %s98_s22  }
  0x13   : > { %p1528_p5 = por %p109_p2, %p108_p0  ;;  %p1532_p6 = por %p115_p4, %p114_p3 }
  0x14   : > { %2240 = sst [smem:[#allocation18_spill]] %s1526_s24  ;;  %p148_p8 = scmp.lt.s32.totalorder %s1454_s18, 3 }
  0x15   : > { %s2242_s26 = scalar_select %p1532_p6, 1, 0 }
  0x16   : > { %p1256_p9 = scmp.eq.s32.totalorder %s1511_s19, 0  ;;  %p149_p10 = pnand %p1165_p7, %p148_p8 }
  0x17   : > { %2243 = sst [smem:[#allocation19_spill]] %s2242_s26  ;;  %s1456_s7 = smov [#allocation3]  }
  0x18   : > { %s2244_s1 = sld [smem:[#allocation22_spill]]  ;;  %p1242_p11 = pneg %p149_p10 }
  0x19   : > { %s2245_s2 = sld [smem:[#allocation23_spill]]  ;;  %s1457_s8 = smov [#allocation6]  }
  0x1a   : > { %p1243_p12 = pnand %p1256_p9, %p1242_p11 }
  0x1d   : > { %191 = sbr.rel (%p149_p10) target bundleno = 569 (0x239), region = 32 }
  0x1e   : > { %s160_s29 = sshll.u32 %s2244_s1, 4  ;;  %s161_s29 = int_to_ptr.vmem [resolvable:$true] %s160_s29 }
  0x1f   : > { %s170_s6 = sshll.u32 %s2245_s2, 4  ;;  %s171_s6 = int_to_ptr.vmem [resolvable:$true] %s170_s6 }
  0x20   : > { %1245 = dma.vmem_to_smem (!%p1243_p12), %s161_s29, 64, %s1456_s7, [#allocation5]  }
  0x21   : > { %1248 = dma.vmem_to_smem (!%p1243_p12), %s171_s6, 16, %s1457_s8, [#allocation7]  }
  0x22   : > { %1425 = dma.done.wait (%p1256_p9), [#allocation5], 64  }
  0x23   : > { %1427 = vsyncadd (%p1256_p9), [#allocation5], 4294967232 }
  0x24   : > { %1429 = dma.done.wait (%p1256_p9), [#allocation7], 16  }
  0x25   : > { %1431 = vsyncadd (%p1256_p9), [#allocation7], 4294967280 }
  0x26   : > { %203 = sfence }
  0x27   : > { %p229_p13 = scmp.lt.s32.totalorder %s1511_s19, 1  ;;  %s2246_s0 = sld [smem:[#allocation21_spill]]  ;;  %vm243_vm0 = vcmask 1046528   ;;  %vm256_vm1 = vcmask 1045504   ;;  %vm291_vm2 = vcmask 146432   ;;  %v1459_v20 = vmov 0.0  }
  0x28   : > { %s1458_s14 = smov 2   ;;  %292 = vst.msk [vmem:[#allocation2] sm:$0xff] %vm291_vm2, %v1459_v20  ;;  %v1460_v23 = vmov 0.7853982   ;;  %s2222_s20 = smov 127   ;;  %vm294_vm5 = vcmask 140288  }
  0x29   : > { %s230_s9 = scalar_select %p229_p13, %s1511_s19, 1  ;;  %293 = vst.msk [vmem:[#allocation2 + $0x8] sm:$0xff] %vm291_vm2, %v1459_v20  ;;  %vm302_vm6 = vcmask 138248   ;;  %vm288_vm7 = vcmask 130048  }
  0x2a   : > { %s2220_s22 = smov 126   ;;  %295 = vst.msk [vmem:[#allocation2 + $0x10] sm:$0x3] %vm294_vm5, %v1459_v20  ;;  %s1568_s23 = sld [smem:[#allocation3 + $0x1]] }
  0x2b   : > { %s1229_s10 = smul.u32 24, %s230_s9  ;;  %s1570_s27 = sld [smem:[#allocation3 + $0x2]] }
  0x2c   : > { %s1572_s28 = sld [smem:[#allocation3 + $0x82]]  ;;  %s2248_s1 = smov 126  }
  0x2d   : > { %s233_s13 = scalar_lea.vmem %s2246_s0, %s1229_s10  ;;  %s1574_s29 = sld [smem:[#allocation3 + $0x101]] }
  0x2e   : > { %v234_v0 = vld [vmem:[%s233_s13] sm:$0xff]  ;;  %v235_v1 = vld [vmem:[%s233_s13 + $0x8] sm:$0xff]  ;;  %v236_v2 = vld [vmem:[%s233_s13 + $0x10] sm:$0x3]  ;;  %s1576_s30 = sld [smem:[#allocation3 + $0x81]]  ;;  %s2247_s0 = smov 127  }
  0x2f   : > { %v237_v3 = vmul.f32 2.0, %v234_v0  ;;  %v238_v4 = vmul.f32 2.0, %v235_v1  ;;  %v239_v5 = vmul.f32 2.0, %v236_v2  ;;  %v257_v6 = vrot.slane %v234_v0, 2  ;;  %s1578_s5 = sld [smem:[#allocation3 + $0x181]]  ;;  %s1631_s15 = sand.u32 1, %s1446_s16  }
  0x30   : > { %v258_v7 = vrot.slane %v235_v1, 2  ;;  %v260_v15 = vrot.slane %v236_v2, 2  ;;  %s1580_s6 = sld [smem:[#allocation3 + $0x4]]  ;;  %v313_v29 = vstv %s1568_s23 }
  0x31   : > { %v244_v8 = vrot.slane %v237_v3, 1  ;;  %v245_v9 = vrot.slane %v238_v4, 1  ;;  %v247_v10 = vrot.slane %v239_v5, 1  ;;  %s1582_s7 = sld [smem:[#allocation3 + $0x102]]  ;;  %v327_v30 = vstv %s1570_s27 }
  0x32   : > { %v259_v12 = vsel %vm256_vm1, %v257_v6, %v258_v7  ;;  %v261_v18 = vsel %vm256_vm1, %v258_v7, %v260_v15  ;;  %s1584_s8 = sld [smem:[#allocation3 + $0x7]]  ;;  %v481_v35 = vstv %s1572_s28 }
  0x33   : > { %v246_v11 = vsel %vm243_vm0, %v244_v8, %v245_v9  ;;  %v248_v14 = vsel %vm243_vm0, %v245_v9, %v247_v10  ;;  %s1587_s9 = sld [smem:[#allocation3 + $0x182]]  ;;  %v621_v36 = vstv %s1574_s29  ;;  %s1172_s29 = sshll.u32 %s1631_s15, 4 }
  0x34   : > { %v251_v13 = vadd.f32 %v246_v11, %v234_v0  ;;  %v252_v17 = vadd.f32 %v248_v14, %v235_v1  ;;  %s1589_s10 = sld [smem:[#allocation3 + $0x8]]  ;;  %v467_v38 = vstv %s1576_s30 }
  0x35   : > { %s1591_s11 = sld [smem:[#allocation3 + $0x84]]  ;;  %v775_v39 = vstv %s1578_s5 }
  0x36   : > { %v264_v16 = vadd.f32 %v259_v12, %v251_v13  ;;  %v265_v19 = vadd.f32 %v261_v18, %v252_v17  ;;  %s1593_s12 = sld [smem:[#allocation3 + $0x5]]  ;;  %v358_v40 = vstv %s1580_s6 }
  0x37   : > { %s1595_s13 = sld [smem:[#allocation3 + $0x85]]  ;;  %v635_v41 = vstv %s1582_s7 }
  0x38   : > { %268 = vrot.lane.b32.xlu0 %v264_v16, %s1458_s14  ;;  %s1610_s23 = sld [smem:[#allocation3 + $0x88]]  ;;  %v1643_v45 = vstv %s1584_s8 }
  0x39   : > { %s1612_s27 = sld [smem:[#allocation3 + $0x185]]  ;;  %v789_v46 = vstv %s1587_s9 }
  0x3a   : > { %s1616_s2 = sld [smem:[#allocation3 + $0x107]]  ;;  %v1647_v47 = vstv %s1589_s10 }
  0x3b   : > { %s1618_s24 = sld [smem:[#allocation3 + $0x187]]  ;;  %v1650_v48 = vstv %s1591_s11 }
  0x3c   : > { %s1620_s17 = sld [smem:[#allocation3 + $0x108]]  ;;  %v1659_v50 = vstv %s1593_s12 }
  0x3d   : > { %s1623_s21 = sld [smem:[#allocation3 + $0x188]]  ;;  %v1662_v51 = vstv %s1595_s13  ;;  %s1010_s13 = scalar_lea.sflag [#allocation4], %s1631_s15 }
  0x3e   : > { %s1626_s26 = sld [smem:[#allocation3 + $0x3]]  ;;  %v1672_v54 = vstv %s1610_s23 }
  0x3f   : > { %v1684_v58 = vstv %s1612_s27  ;;  %s1950_s28 = sld [smem:[#allocation3 + $0x186]] }
  0x40   : > { %270 = vrot.lane.b32.xlu0 %v265_v19, %s1458_s14  ;;  %s1599_s14 = sld [smem:[#allocation3 + $0x184]]  ;;  %v1687_v59 = vstv %s1616_s2  ;;  %s1718_s2 = scalar_lea.vmem [#allocation8], %s1172_s29 }
  0x41   : > { %v1690_v60 = vstv %s1618_s24  ;;  %s1875_s24 = sld [smem:[#allocation3 + $0x183]] }
  0x42   : > { %v1693_v61 = vstv %s1620_s17  ;;  %s1852_s17 = sld [smem:[#allocation3 + $0x83]] }
  0x43   : > { %v1696_v62 = vstv %s1623_s21  ;;  %s1861_s21 = sld [smem:[#allocation3 + $0x103]] }
  0x44   : > { %v1705_v3 = vstv %s1626_s26  ;;  %s1895_s26 = sld [smem:[#allocation3 + $0x6]] }
  0x45   : > { %s1197_s30 = sld [smem:[#allocation3 + $0x104]] }
  0x46   : > { %v1653_v49 = vstv %s1599_s14  ;;  %s2094_s5 = sld [smem:[#allocation3 + $0x100]] }
  0x47   : > { %s2098_s6 = sld [smem:[#allocation3 + $0x180]] }
  0x48   : > { %s308_s7 = sld [smem:[#allocation3]] }
  0x49   : > { %s1183_s8 = sld [smem:[#allocation3 + $0x80]] }
  0xaa   : > { %v269_v21 = vpop.permute.xlu0 %268 }
  0xab   : > { %v274_v22 = vsub.f32 %v264_v16, %v269_v21 }
  0xad   : > { %vm276_vm3 = vcmp.eq.f32.partialorder %v274_v22, 0.0 }
  0xae   : > { %v278_v24 = vsel %vm276_vm3, nan, %v1460_v23 }
  0xaf   : > { %296 = vrot.lane.b32.xlu2 %v278_v24, %s2222_s20  ;;  %282 = vrot.lane.b32.xlu1 %v278_v24, %s2220_s22 }
  0xb2   : > { %v271_v25 = vpop.permute.xlu0 %270 }
  0xb3   : > { %v275_v26 = vsub.f32 %v265_v19, %v271_v25 }
  0xb5   : > { %vm277_vm4 = vcmp.eq.f32.partialorder %v275_v26, 0.0 }
  0xb6   : > { %v279_v27 = vsel %vm277_vm4, nan, %v1460_v23 }
  0xb7   : > { %298 = vrot.lane.b32.xlu2 %v279_v27, %s2222_s20  ;;  %284 = vrot.lane.b32.xlu1 %v279_v27, %s2220_s22  ;;  %s1601_s22 = sld [smem:[#allocation3 + $0x105]] }
  0xb8   : > { %s1605_s20 = sld [smem:[#allocation3 + $0x87]] }
  0xbd   : > { %v1666_v52 = vstv %s1601_s22  ;;  %s1934_s22 = sld [smem:[#allocation3 + $0x106]] }
  0xbe   : > { %v1669_v53 = vstv %s1605_s20  ;;  %s1916_s20 = sld [smem:[#allocation3 + $0x86]] }
 0x109   : > { %v297_v28 = vpop.permute.xlu2 %296 }
 0x10a   : > { %303 = vst.msk [vmem:[#allocation2 + $0x1] sm:$0xff] %vm302_vm6, %v297_v28 }
 0x111   : > { %v1603_v31 = vld [vmem:[#allocation2] sm:$0xff]  ;;  %v299_v32 = vpop.permute.xlu2 %298 }
 0x112   : > { %304 = vst.msk [vmem:[#allocation2 + $0x9] sm:$0xff] %vm302_vm6, %v299_v32  ;;  %v314_v33 = vmul.f32 %v313_v29, %v1603_v31  ;;  %v328_v34 = vmul.f32 %v327_v30, %v1603_v31  ;;  %v482_v42 = vmul.f32 %v481_v35, %v1603_v31  ;;  %v1676_v55 = vmul.f32 %v1643_v45, %v1603_v31 }
 0x113   : > { %v1679_v56 = vmul.f32 %v358_v40, %v1603_v31  ;;  %v821_v57 = vmul.f32 %v1653_v49, %v1603_v31  ;;  %v468_v0 = vmul.f32 %v467_v38, %v1603_v31  ;;  %v776_v1 = vmul.f32 %v775_v39, %v1603_v31 }
 0x114   : > { %318 = vrot.lane.b32.xlu0 %v314_v33, %s2247_s0  ;;  %332 = vrot.lane.b32.xlu2 %v328_v34, %s2248_s1  ;;  %v688_v2 = vmul.f32 %v1666_v52, %v1603_v31  ;;  %v622_v5 = vmul.f32 %v621_v36, %v1603_v31  ;;  %v1709_v6 = vmul.f32 %v635_v41, %v1603_v31  ;;  %v424_v10 = vrot.slane %v1676_v55, 2 }
 0x115   : > { %v1712_v7 = vmul.f32 %v789_v46, %v1603_v31  ;;  %v1716_v8 = vmul.f32 %v1659_v50, %v1603_v31  ;;  %v365_v11 = vrot.slane %v1679_v56, 1  ;;  %v827_v12 = vrot.slane %v821_v57, 1 }
 0x116   : > { %v593_v16 = vmul.f32 %v1672_v54, %v1603_v31  ;;  %v694_v18 = vrot.slane %v688_v2, 1  ;;  %v842_v19 = vmul.f32 %v1684_v58, %v1603_v31  ;;  %v572_v20 = vmul.f32 %v1669_v53, %v1603_v31 }
 0x117   : > { %v1750_v23 = vmul.f32 %v1690_v60, %v1603_v31  ;;  %v1754_v24 = vmul.f32 %v1693_v61, %v1603_v31 }
 0x119   : > { %v1628_v37 = vld [vmem:[#allocation2 + $0x8] sm:$0xff]  ;;  %v1698_v63 = vld [vmem:[#allocation2 + $0x10] sm:$0x3]  ;;  %v886_v56 = vrot.slane %v1750_v23, 2 }
 0x11a   : > { %v329_v43 = vmul.f32 %v327_v30, %v1628_v37  ;;  %v315_v44 = vmul.f32 %v313_v29, %v1628_v37  ;;  %v623_v9 = vmul.f32 %v621_v36, %v1628_v37  ;;  %v469_v13 = vmul.f32 %v467_v38, %v1628_v37 }
 0x11b   : > { %v360_v14 = vmul.f32 %v358_v40, %v1628_v37  ;;  %v361_v15 = vmul.f32 %v358_v40, %v1698_v63  ;;  %v1734_v17 = vmul.f32 %v1653_v49, %v1628_v37  ;;  %v483_v21 = vmul.f32 %v481_v35, %v1628_v37 }
 0x11c   : > { %486 = vrot.lane.b32.xlu2 %v482_v42, %s2248_s1  ;;  %334 = vrot.lane.b32.xlu0 %v329_v43, %s2248_s1  ;;  %v1746_v22 = vmul.f32 %v1643_v45, %v1628_v37  ;;  %v1757_v25 = vmul.f32 %v635_v41, %v1628_v37  ;;  %v1760_v26 = vmul.f32 %v775_v39, %v1628_v37  ;;  %v599_v38 = vrot.slane %v593_v16, 2 }
 0x11d   : > { %320 = vrot.lane.b32.xlu1 %v315_v44, %s2247_s0  ;;  %v2230_v27 = vrot.slane %v1734_v17, 1  ;;  %v1765_v28 = vmul.f32 %v1666_v52, %v1628_v37  ;;  %v366_v29 = vrot.slane %v360_v14, 1  ;;  %v368_v30 = vrot.slane %v361_v15, 1 }
 0x11e   : > { %v1768_v32 = vmul.f32 %v789_v46, %v1628_v37  ;;  %v1772_v33 = vmul.f32 %v1669_v53, %v1628_v37  ;;  %v1776_v34 = vmul.f32 %v1647_v47, %v1628_v37  ;;  %v2233_v40 = vrot.slane %v1746_v22, 2 }
 0x11f   : > { %v1781_v35 = vsel %vm243_vm0, %v827_v12, %v2230_v27  ;;  %v2229_v36 = vrot.slane %v1765_v28, 1  ;;  %v1787_v41 = vmul.f32 %v1647_v47, %v1698_v63  ;;  %v594_v43 = vmul.f32 %v1672_v54, %v1628_v37 }
 0x120   : > { %v2231_v42 = vrot.slane %v1772_v33, 2  ;;  %v1796_v44 = vmul.f32 %v1650_v48, %v1628_v37  ;;  %v1800_v46 = vmul.f32 %v1650_v48, %v1698_v63  ;;  %v369_v2 = vsel %vm243_vm0, %v366_v29, %v368_v30 }
 0x121   : > { %v283_v4 = vpop.permute.xlu1 %282  ;;  %v1805_v57 = vsel %vm243_vm0, %v694_v18, %v2229_v36  ;;  %v578_v12 = vrot.slane %v572_v20, 2  ;;  %v727_v15 = vmul.f32 %v1687_v59, %v1628_v37  ;;  %v728_v16 = vmul.f32 %v1687_v59, %v1698_v63 }
 0x122   : > { %289 = vst.msk [vmem:[%s1718_s2] sm:$0xff] %vm288_vm7, %v283_v4  ;;  %v1812_v4 = vmul.f32 %v1659_v50, %v1628_v37  ;;  %v749_v23 = vmul.f32 %v1693_v61, %v1698_v63 }
 0x123   : > { %v1827_v20 = vsel %vm256_vm1, %v578_v12, %v2231_v42  ;;  %v881_v12 = vmul.f32 %v1690_v60, %v1628_v37  ;;  %v400_v42 = vstv %s1895_s26 }
 0x124   : > { %628 = vrot.lane.b32.xlu2 %v623_v9, %s2247_s0  ;;  %472 = vrot.lane.b32.xlu0 %v468_v0, %s2247_s0  ;;  %v843_v0 = vmul.f32 %v1684_v58, %v1628_v37  ;;  %v600_v9 = vrot.slane %v594_v43, 2 }
 0x125   : > { %474 = vrot.lane.b32.xlu1 %v469_v13, %s2247_s0  ;;  %v848_v13 = vrot.slane %v842_v19, 1  ;;  %v844_v19 = vmul.f32 %v1684_v58, %v1698_v63 }
 0x126   : > { %v849_v14 = vrot.slane %v843_v0, 1  ;;  %v1822_v18 = vsel %vm256_vm1, %v599_v38, %v600_v9  ;;  %v448_v38 = vrot.slane %v1787_v41, 2 }
 0x127   : > { %v851_v0 = vrot.slane %v844_v19, 1 }
 0x128   : > { %v1835_v30 = vsel %vm243_vm0, %v848_v13, %v849_v14  ;;  %v748_v13 = vmul.f32 %v1693_v61, %v1628_v37 }
 0x129   : > { %v285_v39 = vpop.permute.xlu1 %284 }
 0x12a   : > { %290 = vst.msk [vmem:[%s1718_s2 + $0x8] sm:$0xff] %vm288_vm7, %v285_v39  ;;  %v735_v39 = vrot.slane %v728_v16, 2  ;;  %v1858_v16 = vsel %vm243_vm0, %v849_v14, %v851_v0  ;;  %v882_v14 = vmul.f32 %v1690_v60, %v1698_v63 }
 0x12c   : > { %780 = vrot.lane.b32.xlu2 %v776_v1, %s2247_s0  ;;  %488 = vrot.lane.b32.xlu0 %v483_v21, %s2248_s1  ;;  %v595_v1 = vmul.f32 %v1672_v54, %v1698_v63  ;;  %v2232_v21 = vrot.slane %v1776_v34, 2  ;;  %v1843_v54 = vsel %vm243_vm0, %v365_v11, %v366_v29  ;;  %v887_v11 = vrot.slane %v881_v12, 2 }
 0x12d   : > { %626 = vrot.lane.b32.xlu1 %v622_v5, %s2247_s0  ;;  %v733_v5 = vrot.slane %v727_v15, 2  ;;  %v726_v15 = vmul.f32 %v1687_v59, %v1603_v31  ;;  %v753_v29 = vrot.slane %v1754_v24, 2  ;;  %v902_v59 = vmul.f32 %v1696_v62, %v1628_v37 }
 0x12e   : > { %v602_v43 = vrot.slane %v595_v1, 2  ;;  %v754_v1 = vrot.slane %v748_v13, 2  ;;  %v426_v24 = vsel %vm256_vm1, %v424_v10, %v2233_v40  ;;  %v889_v0 = vrot.slane %v882_v14, 2 }
 0x12f   : > { %v1846_v58 = vsel %vm256_vm1, %v733_v5, %v735_v39  ;;  %v732_v19 = vrot.slane %v726_v15, 2  ;;  %v1867_v39 = vsel %vm256_vm1, %v886_v56, %v887_v11  ;;  %v908_v61 = vrot.slane %v902_v59, 2 }
 0x130   : > { %v1855_v41 = vsel %vm256_vm1, %v600_v9, %v602_v43  ;;  %v903_v9 = vmul.f32 %v1696_v62, %v1698_v63  ;;  %v1886_v43 = vsel %vm256_vm1, %v753_v29, %v754_v1  ;;  %v756_v12 = vrot.slane %v749_v23, 2 }
 0x131   : > { %v1889_v60 = vsel %vm256_vm1, %v732_v19, %v733_v5  ;;  %v344_v5 = vmul.f32 %v1705_v3, %v1698_v63  ;;  %v1907_v15 = vsel %vm256_vm1, %v887_v11, %v889_v0  ;;  %v449_v19 = vsel %vm256_vm1, %v2232_v21, %v448_v38 }
 0x132   : > { %v1910_v56 = vsel %vm256_vm1, %v754_v1, %v756_v12  ;;  %v495_v11 = vstv %s1852_s17  ;;  %v649_v23 = vstv %s1861_s21  ;;  %v342_v1 = vmul.f32 %v1705_v3, %v1603_v31 }
 0x133   : > { %v497_v0 = vmul.f32 %v495_v11, %v1628_v37  ;;  %v498_v12 = vmul.f32 %v495_v11, %v1698_v63 }
 0x134   : > { %372 = vrot.lane.b32.xlu2 %v369_v2, %s2247_s0  ;;  %640 = vrot.lane.b32.xlu0 %v1709_v6, %s2248_s1  ;;  %v910_v2 = vrot.slane %v903_v9, 2  ;;  %v343_v6 = vmul.f32 %v1705_v3, %v1628_v37  ;;  %v351_v9 = vrot.slane %v344_v5, 1  ;;  %v348_v5 = vrot.slane %v342_v1, 1 }
 0x135   : > { %642 = vrot.lane.b32.xlu1 %v1757_v25, %s2248_s1  ;;  %v901_v25 = vmul.f32 %v1696_v62, %v1603_v31  ;;  %v1920_v62 = vmul.f32 %v1659_v50, %v1698_v63  ;;  %v651_v50 = vmul.f32 %v649_v23, %v1628_v37  ;;  %v503_v3 = vrot.slane %v497_v0, 1 }
 0x136   : > { %v1904_v13 = vsel %vm256_vm1, %v908_v61, %v910_v2  ;;  %v349_v29 = vrot.slane %v343_v6, 1  ;;  %v652_v6 = vmul.f32 %v649_v23, %v1698_v63 }
 0x137   : > { %v907_v14 = vrot.slane %v901_v25, 2  ;;  %v803_v25 = vstv %s1875_s24  ;;  %v657_v36 = vrot.slane %v651_v50, 1  ;;  %v403_v50 = vmul.f32 %v400_v42, %v1698_v63 }
 0x138   : > { %v1927_v2 = vsel %vm243_vm0, %v349_v29, %v351_v9  ;;  %v804_v9 = vmul.f32 %v803_v25, %v1603_v31  ;;  %v659_v27 = vrot.slane %v652_v6, 1  ;;  %v1947_v1 = vsel %vm243_vm0, %v348_v5, %v349_v29 }
 0x139   : > { %v1930_v38 = vsel %vm256_vm1, %v907_v14, %v908_v61  ;;  %v505_v61 = vrot.slane %v498_v12, 1  ;;  %v805_v14 = vmul.f32 %v803_v25, %v1628_v37  ;;  %v401_v12 = vmul.f32 %v400_v42, %v1603_v31 }
 0x13a   : > { %v1957_v21 = vsel %vm243_vm0, %v657_v36, %v659_v27  ;;  %v496_v29 = vmul.f32 %v495_v11, %v1603_v31  ;;  %v410_v40 = vrot.slane %v403_v50, 2 }
 0x13b   : > { %v811_v0 = vrot.slane %v805_v14, 1  ;;  %2249 = vst [vmem:[#allocation20_spill] sm:$0xff] %v1957_v21  ;;  %v407_v5 = vrot.slane %v401_v12, 2  ;;  %v708_v21 = vstv %s1934_s22 }
 0x13c   : > { %429 = vrot.lane.b32.xlu2 %v426_v24, %s2247_s0  ;;  %782 = vrot.lane.b32.xlu0 %v1760_v26, %s2247_s0  ;;  %v1953_v26 = vsel %vm243_vm0, %v503_v3, %v505_v61  ;;  %v810_v24 = vrot.slane %v804_v9, 1  ;;  %v554_v61 = vstv %s1916_s20  ;;  %v650_v9 = vmul.f32 %v649_v23, %v1603_v31 }
 0x13d   : > { %796 = vrot.lane.b32.xlu1 %v1768_v32, %s2248_s1  ;;  %v402_v32 = vmul.f32 %v400_v42, %v1628_v37  ;;  %v502_v59 = vrot.slane %v496_v29, 1  ;;  %v556_v55 = vmul.f32 %v554_v61, %v1628_v37  ;;  %v557_v27 = vmul.f32 %v554_v61, %v1698_v63 }
 0x13e   : > { %v1963_v6 = vsel %vm243_vm0, %v810_v24, %v811_v0  ;;  %v656_v10 = vrot.slane %v650_v9, 1  ;;  %v806_v42 = vmul.f32 %v803_v25, %v1698_v63  ;;  %v710_v25 = vmul.f32 %v708_v21, %v1628_v37 }
 0x13f   : > { %v408_v14 = vrot.slane %v402_v32, 2  ;;  %v1978_v23 = vsel %vm243_vm0, %v502_v59, %v503_v3  ;;  %v562_v12 = vrot.slane %v556_v55, 2  ;;  %v564_v32 = vrot.slane %v557_v27, 2 }
 0x140   : > { %v1984_v50 = vsel %vm243_vm0, %v656_v10, %v657_v36  ;;  %v711_v29 = vmul.f32 %v708_v21, %v1698_v63  ;;  %v555_v59 = vmul.f32 %v554_v61, %v1603_v31  ;;  %v862_v55 = vstv %s1950_s28 }
 0x141   : > { %v1972_v11 = vsel %vm256_vm1, %v407_v5, %v408_v14  ;;  %v1975_v24 = vsel %vm256_vm1, %v408_v14, %v410_v40  ;;  %v813_v40 = vrot.slane %v806_v42, 1  ;;  %v1994_v3 = vsel %vm256_vm1, %v562_v12, %v564_v32 }
 0x142   : > { %v718_v5 = vrot.slane %v711_v29, 2  ;;  %v863_v36 = vmul.f32 %v862_v55, %v1603_v31  ;;  %v561_v9 = vrot.slane %v555_v59, 2  ;;  %v864_v14 = vmul.f32 %v862_v55, %v1628_v37 }
 0x143   : > { %v1998_v10 = vsel %vm243_vm0, %v811_v0, %v813_v40  ;;  %v386_v27 = vrot.slane %v1716_v8, 1  ;;  %v389_v61 = vrot.slane %v1920_v62, 1  ;;  %v865_v42 = vmul.f32 %v862_v55, %v1698_v63 }
 0x144   : > { %452 = vrot.lane.b32.xlu2 %v449_v19, %s2248_s1  ;;  %794 = vrot.lane.b32.xlu0 %v1712_v7, %s2248_s1  ;;  %v709_v19 = vmul.f32 %v708_v21, %v1603_v31  ;;  %v716_v7 = vrot.slane %v710_v25, 2  ;;  %v2008_v32 = vsel %vm256_vm1, %v561_v9, %v562_v12  ;;  %v869_v25 = vrot.slane %v863_v36, 2 }
 0x145   : > { %370 = vrot.lane.b32.xlu1 %v1843_v54, %s2247_s0  ;;  %v870_v0 = vrot.slane %v864_v14, 2  ;;  %v535_v40 = vmul.f32 %v1662_v51, %v1628_v37  ;;  %v872_v8 = vrot.slane %v865_v42, 2  ;;  %v2250_v62 = vrot.slane %v1800_v46, 1 }
 0x146   : > { %v715_v54 = vrot.slane %v709_v19, 2  ;;  %v2004_v21 = vsel %vm256_vm1, %v716_v7, %v718_v5  ;;  %v2251_v59 = vrot.slane %v1796_v44, 1  ;;  %v2252_v55 = vrot.slane %v1812_v4, 1 }
 0x147   : > { %v420_v5 = vmul.f32 %v1643_v45, %v1698_v63  ;;  %v2034_v9 = vsel %vm256_vm1, %v870_v0, %v872_v8  ;;  %v534_v14 = vmul.f32 %v1662_v51, %v1603_v31  ;;  %v439_v45 = vmul.f32 %v1647_v47, %v1603_v31 }
 0x148   : > { %v2011_v29 = vsel %vm256_vm1, %v715_v54, %v716_v7  ;;  %v523_v19 = vsel %vm243_vm0, %v2251_v59, %v2250_v62  ;;  %v388_v12 = vsel %vm243_vm0, %v386_v27, %v2252_v55  ;;  %v2026_v7 = vsel %vm256_vm1, %v869_v25, %v870_v0 }
 0x149   : > { %v2253_v46 = vmov %v2252_v55  ;;  %v541_v54 = vrot.slane %v535_v40, 1  ;;  %v427_v27 = vrot.slane %v420_v5, 2  ;;  %v540_v42 = vrot.slane %v534_v14, 1 }
 0x14a   : > { %v390_v36 = vsel %vm243_vm0, %v2253_v46, %v389_v61  ;;  %v666_v25 = vstv %s1197_s30  ;;  %v445_v62 = vrot.slane %v439_v45, 2  ;;  %v2254_v0 = vrot.slane %v1746_v22, 2 }
 0x14b   : > { %v668_v4 = vmul.f32 %v666_v25, %v1628_v37  ;;  %v542_v61 = vsel %vm243_vm0, %v540_v42, %v541_v54  ;;  %v669_v59 = vmul.f32 %v666_v25, %v1698_v63  ;;  %v2255_v47 = vrot.slane %v1776_v34, 2 }
 0x14c   : > { %526 = vrot.lane.b32.xlu2 %v523_v19, %s2247_s0  ;;  %391 = vrot.lane.b32.xlu0 %v388_v12, %s2248_s1  ;;  %v428_v8 = vsel %vm256_vm1, %v2254_v0, %v427_v27  ;;  %v536_v19 = vmul.f32 %v1662_v51, %v1698_v63  ;;  %v513_v22 = vmul.f32 %v1650_v48, %v1603_v31  ;;  %v2256_v34 = vrot.slane %v1796_v44, 1 }
 0x14d   : > { %393 = vrot.lane.b32.xlu1 %v390_v36, %s2248_s1  ;;  %v447_v40 = vsel %vm256_vm1, %v445_v62, %v2255_v47  ;;  %v674_v55 = vrot.slane %v668_v4, 1  ;;  %v676_v12 = vrot.slane %v669_v59, 1  ;;  %v667_v48 = vmul.f32 %v666_v25, %v1603_v31 }
 0x14e   : > { %v543_v5 = vrot.slane %v536_v19, 1  ;;  %v519_v46 = vrot.slane %v513_v22, 1  ;;  %v574_v27 = vmul.f32 %v1669_v53, %v1698_v63  ;;  %v823_v42 = vmul.f32 %v1653_v49, %v1698_v63 }
 0x14f   : > { %v677_v36 = vsel %vm243_vm0, %v674_v55, %v676_v12  ;;  %v673_v45 = vrot.slane %v667_v48, 1  ;;  %v2257_v53 = vrot.slane %v1772_v33, 2  ;;  %v309_v0 = vstv %s308_s7 }
 0x150   : > { %v544_v51 = vsel %vm243_vm0, %v541_v54, %v543_v5  ;;  %v521_v14 = vsel %vm243_vm0, %v519_v46, %v2256_v34  ;;  %v690_v54 = vmul.f32 %v1666_v52, %v1698_v63  ;;  %v581_v25 = vrot.slane %v574_v27, 2 }
 0x151   : > { %v675_v44 = vsel %vm243_vm0, %v673_v45, %v674_v55  ;;  %v830_v62 = vrot.slane %v823_v42, 1  ;;  %v463_v12 = vstv %s1183_s8 }
 0x152   : > { %v697_v4 = vrot.slane %v690_v54, 1  ;;  %v582_v49 = vsel %vm256_vm1, %v2257_v53, %v581_v25 }
 0x154   : > { %545 = vrot.lane.b32.xlu2 %v542_v61, %s2248_s1  ;;  %431 = vrot.lane.b32.xlu0 %v428_v8, %s2247_s0  ;;  %v2258_v61 = vrot.slane %v1734_v17, 1 }
 0x155   : > { %450 = vrot.lane.b32.xlu1 %v447_v40, %s2248_s1 }
 0x15c   : > { %680 = vrot.lane.b32.xlu2 %v677_v36, %s2247_s0  ;;  %547 = vrot.lane.b32.xlu0 %v544_v51, %s2248_s1 }
 0x15d   : > { %524 = vrot.lane.b32.xlu1 %v521_v14, %s2247_s0 }
 0x164   : > { %832 = vrot.lane.b32.xlu2 %v1781_v35, %s2247_s0  ;;  %699 = vrot.lane.b32.xlu0 %v1805_v57, %s2248_s1  ;;  %v831_v35 = vsel %vm243_vm0, %v2258_v61, %v830_v62  ;;  %v2259_v57 = vrot.slane %v1765_v28, 1  ;;  %v617_v28 = vstv %s2094_s5  ;;  %v2260_v61 = vld [vmem:[#allocation20_spill] sm:$0xff] }
 0x165   : > { %678 = vrot.lane.b32.xlu1 %v675_v44, %s2247_s0  ;;  %v619_v33 = vmul.f32 %v617_v28, %v1628_v37  ;;  %v618_v45 = vmul.f32 %v617_v28, %v1603_v31 }
 0x166   : > { %v698_v52 = vsel %vm243_vm0, %v2259_v57, %v697_v4 }
 0x16c   : > { %585 = vrot.lane.b32.xlu2 %v582_v49, %s2247_s0  ;;  %834 = vrot.lane.b32.xlu0 %v831_v35, %s2247_s0 }
 0x16d   : > { %701 = vrot.lane.b32.xlu1 %v698_v52, %s2248_s1 }
 0x16e   : > { %v333_v63 = vpop.permute.xlu2 %332 }
 0x174   : > { %604 = vrot.lane.b32.xlu2 %v1822_v18, %s2248_s1  ;;  %853 = vrot.lane.b32.xlu0 %v1835_v30, %s2248_s1 }
 0x175   : > { %583 = vrot.lane.b32.xlu1 %v1827_v20, %s2247_s0  ;;  %v771_v20 = vstv %s2098_s6 }
 0x176   : > { %v487_v17 = vpop.permute.xlu2 %486 }
 0x17c   : > { %739 = vrot.lane.b32.xlu2 %v1846_v58, %s2247_s0  ;;  %606 = vrot.lane.b32.xlu0 %v1855_v41, %s2248_s1  ;;  %v772_v58 = vmul.f32 %v771_v20, %v1603_v31  ;;  %v310_v41 = vmul.f32 %v309_v0, %v1603_v31 }
 0x17d   : > { %855 = vrot.lane.b32.xlu1 %v1858_v16, %s2248_s1 }
 0x17e   : > { %v629_v18 = vpop.permute.xlu2 %628 }
 0x17f   : > { %v633_v30 = vadd.f32 %v629_v18, %v619_v33 }
 0x184   : > { %891 = vrot.lane.b32.xlu2 %v1867_v39, %s2247_s0  ;;  %758 = vrot.lane.b32.xlu0 %v1886_v43, %s2248_s1  ;;  %v311_v39 = vmul.f32 %v309_v0, %v1628_v37 }
 0x185   : > { %737 = vrot.lane.b32.xlu1 %v1889_v60, %s2247_s0 }
 0x186   : > { %v781_v16 = vpop.permute.xlu2 %780  ;;  %v319_v8 = vpop.permute.xlu0 %318 }
 0x187   : > { %v786_v59 = vadd.f32 %v781_v16, %v772_v58  ;;  %v324_v19 = vadd.f32 %v319_v8, %v310_v41 }
 0x189   : > { %v338_v47 = vadd.f32 %v333_v63, %v324_v19 }
 0x18b   : > { %v355_v5 = vadd.f32 %v1947_v1, %v338_v47 }
 0x18c   : > { %914 = vrot.lane.b32.xlu2 %v1904_v13, %s2248_s1  ;;  %893 = vrot.lane.b32.xlu0 %v1907_v15, %s2247_s0  ;;  %v464_v13 = vmul.f32 %v463_v12, %v1603_v31  ;;  %v465_v15 = vmul.f32 %v463_v12, %v1628_v37  ;;  %v773_v31 = vmul.f32 %v771_v20, %v1628_v37  ;;  %s1027_s0 = sshll.u32 %s1718_s2, 4  ;;  %s1372_s2 = scalar_lea.hbm %s2218_s3, 32  ;;  %s2138_s0 = int_to_ptr.vmem [resolvable:$true] %s1027_s0 }
 0x18d   : > { %760 = vrot.lane.b32.xlu1 %v1910_v56, %s2248_s1 }
 0x18e   : > { %v335_v43 = vpop.permute.xlu0 %334  ;;  %v373_v22 = vpop.permute.xlu2 %372 }
 0x18f   : > { %v321_v60 = vpop.permute.xlu1 %320 }
 0x190   : > { %v325_v40 = vadd.f32 %v321_v60, %v311_v39 }
 0x192   : > { %v339_v55 = vadd.f32 %v335_v43, %v325_v40 }
 0x194   : > { %v356_v46 = vadd.f32 %v1927_v2, %v339_v55 }
 0x195   : > { %912 = vrot.lane.b32.xlu1 %v1930_v38, %s2248_s1  ;;  %s1227_s1 = sshll.u32 %s1511_s19, 4 }
 0x196   : > { %v473_v56 = vpop.permute.xlu0 %472  ;;  %v430_v48 = vpop.permute.xlu2 %429  ;;  %v377_v44 = vadd.f32 %v373_v22, %v356_v46  ;;  %s1026_s11 = scalar_lea.hbm %s2218_s3, %s1227_s1 }
 0x197   : > { %v475_v36 = vpop.permute.xlu1 %474  ;;  %v478_v51 = vadd.f32 %v473_v56, %v464_v13  ;;  %s1029_s12 = sshll.u32 %s1026_s11, 4  ;;  %s1030_s12 = int_to_ptr.hbm [resolvable:$true] %s1029_s12 }
 0x198   : > { %v479_v34 = vadd.f32 %v475_v36, %v465_v15  ;;  %s1366_s14 = sshra.s32 %s1030_s12, 4  ;;  %s1367_s14 = int_to_ptr.hbm [resolvable:$true] %s1366_s14 }
 0x199   : > { %v492_v14 = vadd.f32 %v487_v17, %v478_v51  ;;  %s1368_s23 = scalar_lea.hbm %s1367_s14, 16  ;;  %p1373_p3 = scmp.lt.s32.totalorder %s1367_s14, %s2218_s3 }
 0x19a   : > { %p1369_p0 = scmp.ne.s32.totalorder %s1367_s14, %s1368_s23  ;;  %p1374_p4 = scmp.lt.s32.totalorder %s1372_s2, %s1368_s23 }
 0x19b   : > { %v509_v49 = vadd.f32 %v1978_v23, %v492_v14 }
 0x19c   : > { %p1370_p1 = pnand %p1369_p0, %p1528_p5  ;;  %p1375_p7 = por %p1374_p4, %p1373_p3 }
 0x19e   : > { %v489_v27 = vpop.permute.xlu0 %488  ;;  %v453_v54 = vpop.permute.xlu2 %452  ;;  %p1371_p2 = pneg %p1370_p1 }
 0x19f   : > { %v627_v42 = vpop.permute.xlu1 %626  ;;  %v493_v1 = vadd.f32 %v489_v27, %v479_v34 }
 0x1a0   : > { %v632_v2 = vadd.f32 %v627_v42, %v618_v45  ;;  %p1376_p8 = pnand %p1375_p7, %p1371_p2 }
 0x1a1   : > { %v510_v38 = vadd.f32 %v1953_v26, %v493_v1 }
 0x1a6   : > { %v641_v25 = vpop.permute.xlu0 %640  ;;  %v527_v17 = vpop.permute.xlu2 %526 }
 0x1a7   : > { %v643_v62 = vpop.permute.xlu1 %642  ;;  %v646_v4 = vadd.f32 %v641_v25, %v632_v2 }
 0x1a8   : > { %v647_v53 = vadd.f32 %v643_v62, %v633_v30 }
 0x1a9   : > { %v663_v23 = vadd.f32 %v1984_v50, %v646_v4 }
 0x1aa   : > { %v2134_v35 = vadd.f32 %v2260_v61, %v647_v53 }
 0x1ae   : > { %v783_v57 = vpop.permute.xlu0 %782  ;;  %v546_v20 = vpop.permute.xlu2 %545 }
 0x1af   : > { %v797_v52 = vpop.permute.xlu1 %796  ;;  %v787_v63 = vadd.f32 %v783_v57, %v773_v31 }
 0x1b1   : > { %v801_v28 = vadd.f32 %v797_v52, %v787_v63 }
 0x1b6   : > { %v795_v26 = vpop.permute.xlu0 %794 }
 0x1b7   : > { %v371_v33 = vpop.permute.xlu1 %370  ;;  %v800_v18 = vadd.f32 %v795_v26, %v786_v59 }
 0x1b8   : > { %v376_v37 = vadd.f32 %v371_v33, %v355_v5 }
 0x1b9   : > { %v817_v30 = vadd.f32 %v1963_v6, %v800_v18 }
 0x1ba   : > { %1379 = shalt.err (!%p1376_p8)
}
 0x1bb   : > { %s1463_s24 = smov 128   ;;  %s1464_s26 = smov 8   ;;  %v818_v8 = vadd.f32 %v1998_v10, %v801_v28  ;;  %v681_v19 = vpop.permute.xlu2 %680  ;;  %v531_v40 = vadd.f32 %v527_v17, %v510_v38 }
 0x1bc   : > { %1238 = dma.vmem_to_hbm [thread:$0]  (%p1528_p5), %s2138_s0, 256, %s1030_s12, %s1010_s13, %s1463_s24, %s1463_s24, %s1464_s26   ;;  %v685_v14 = vadd.f32 %v681_v19, %v2134_v35 }
 0x1bd   : > { %s458_s20 = sld [smem:[#allocation6]]  ;;  %s1173_s5 = sshll.u32 %s1631_s15, 6 }
 0x1be   : > { %v392_v6 = vpop.permute.xlu0 %391  ;;  %s1192_s22 = sld [smem:[#allocation6 + $0x1]]  ;;  %s1228_s6 = sshll.u32 %s1511_s19, 6 }
 0x1bf   : > { %v394_v50 = vpop.permute.xlu1 %393  ;;  %v397_v0 = vadd.f32 %v392_v6, %v376_v37  ;;  %s1202_s28 = sld [smem:[#allocation6 + $0x2]]  ;;  %s228_s7 = scalar_lea.vmem [#allocation9], %s1173_s5 }
 0x1c0   : > { %v398_v58 = vadd.f32 %v394_v50, %v377_v44  ;;  %s1212_s30 = sld [smem:[#allocation6 + $0x3]]  ;;  %s1043_s1 = scalar_lea.hbm %s2219_s4, %s1228_s6 }
 0x1c1   : > { %v414_v41 = vadd.f32 %v1972_v11, %v397_v0  ;;  %s1044_s19 = sshll.u32 %s228_s7, 4  ;;  %s1046_s9 = sshll.u32 %s1043_s1, 4  ;;  %s1045_s19 = int_to_ptr.vmem [resolvable:$true] %s1044_s19  ;;  %s1047_s9 = int_to_ptr.hbm [resolvable:$true] %s1046_s9 }
 0x1c2   : > { %v415_v16 = vadd.f32 %v1975_v24, %v398_v58  ;;  %s1015_s10 = scalar_lea.sflag [#allocation10], %s1631_s15  ;;  %s1394_s11 = sshra.s32 %s1047_s9, 4  ;;  %s1395_s11 = int_to_ptr.hbm [resolvable:$true] %s1394_s11 }
 0x1c3   : > { %v435_v59 = vadd.f32 %v430_v48, %v414_v41  ;;  %v833_v22 = vpop.permute.xlu2 %832  ;;  %v459_v25 = vstv %s458_s20  ;;  %s1396_s12 = scalar_lea.hbm %s1395_s11, 64  ;;  %s1400_s23 = scalar_lea.hbm %s2219_s4, 128 }
 0x1c4   : > { %v838_v1 = vadd.f32 %v833_v22, %v817_v30  ;;  %p1397_p9 = scmp.ne.s32.totalorder %s1395_s11, %s1396_s12  ;;  %p1401_p12 = scmp.lt.s32.totalorder %s1395_s11, %s2219_s4 }
 0x1c5   : > { %p1402_p13 = scmp.lt.s32.totalorder %s1400_s23, %s1396_s12 }
 0x1c6   : > { %v432_v47 = vpop.permute.xlu0 %431  ;;  %p1398_p10 = pnand %p1397_p9, %p1528_p5 }
 0x1c7   : > { %v451_v39 = vpop.permute.xlu1 %450  ;;  %v436_v43 = vadd.f32 %v432_v47, %v415_v16  ;;  %v921_v47 = vstv %s1212_s30  ;;  %p1403_p0 = por %p1402_p13, %p1401_p12 }
 0x1c8   : > { %v456_v38 = vadd.f32 %v451_v39, %v435_v59  ;;  %p1399_p11 = pneg %p1398_p10 }
 0x1c9   : > { %v457_v60 = vadd.f32 %v453_v54, %v436_v43 }
 0x1ca   : > { %v460_v53 = vadd.f32 %v459_v25, %v456_v38  ;;  %p1404_p1 = pnand %p1403_p0, %p1399_p11 }
 0x1cb   : > { %v586_v10 = vpop.permute.xlu2 %585  ;;  %v461_v28 = vadd.f32 %v459_v25, %v457_v60 }
 0x1ce   : > { %v548_v55 = vpop.permute.xlu0 %547 }
 0x1cf   : > { %v525_v12 = vpop.permute.xlu1 %524  ;;  %v552_v5 = vadd.f32 %v548_v55, %v531_v40 }
 0x1d0   : > { %v530_v46 = vadd.f32 %v525_v12, %v509_v49 }
 0x1d1   : > { %v569_v13 = vadd.f32 %v1994_v3, %v552_v5 }
 0x1d2   : > { %v551_v15 = vadd.f32 %v546_v20, %v530_v46  ;;  %v767_v20 = vstv %s1202_s28 }
 0x1d3   : > { %v605_v42 = vpop.permute.xlu2 %604  ;;  %v590_v35 = vadd.f32 %v586_v10, %v569_v13 }
 0x1d4   : > { %v568_v11 = vadd.f32 %v2008_v32, %v551_v15 }
 0x1d6   : > { %v700_v24 = vpop.permute.xlu0 %699 }
 0x1d7   : > { %v679_v56 = vpop.permute.xlu1 %678 }
 0x1d8   : > { %v684_v36 = vadd.f32 %v679_v56, %v663_v23 }
 0x1da   : > { %v705_v51 = vadd.f32 %v700_v24, %v684_v36 }
 0x1db   : > { %v740_v49 = vpop.permute.xlu2 %739 }
 0x1dc   : > { %v722_v34 = vadd.f32 %v2011_v29, %v705_v51  ;;  %v613_v29 = vstv %s1192_s22 }
 0x1de   : > { %v835_v48 = vpop.permute.xlu0 %834 }
 0x1df   : > { %v702_v45 = vpop.permute.xlu1 %701  ;;  %v839_v31 = vadd.f32 %v835_v48, %v818_v8 }
 0x1e0   : > { %v706_v27 = vadd.f32 %v702_v45, %v685_v14 }
 0x1e2   : > { %v723_v3 = vadd.f32 %v2004_v21, %v706_v27 }
 0x1e3   : > { %v892_v23 = vpop.permute.xlu2 %891 }
 0x1e4   : > { %v744_v58 = vadd.f32 %v740_v49, %v723_v3 }
 0x1e6   : > { %v854_v44 = vpop.permute.xlu0 %853 }
 0x1e7   : > { %v584_v32 = vpop.permute.xlu1 %583  ;;  %v859_v2 = vadd.f32 %v854_v44, %v838_v1 }
 0x1e8   : > { %v589_v54 = vadd.f32 %v584_v32, %v568_v11 }
 0x1e9   : > { %v876_v62 = vadd.f32 %v2026_v7, %v859_v2 }
 0x1ea   : > { %v610_v4 = vadd.f32 %v605_v42, %v589_v54 }
 0x1eb   : > { %v915_v59 = vpop.permute.xlu2 %914  ;;  %v897_v40 = vadd.f32 %v892_v23, %v876_v62 }
 0x1ec   : > { %v614_v61 = vadd.f32 %v613_v29, %v610_v4 }
 0x1ee   : > { %v607_v57 = vpop.permute.xlu0 %606  ;;  %v924_v52 = vmax.f32 %v460_v53, %v614_v61 }
 0x1ef   : > { %v856_v63 = vpop.permute.xlu1 %855  ;;  %v611_v21 = vadd.f32 %v607_v57, %v590_v35 }
 0x1f0   : > { %v860_v17 = vadd.f32 %v856_v63, %v839_v31 }
 0x1f1   : > { %v615_v26 = vadd.f32 %v613_v29, %v611_v21 }
 0x1f2   : > { %v877_v33 = vadd.f32 %v2034_v9, %v860_v17 }
 0x1f3   : > { %v925_v18 = vmax.f32 %v461_v28, %v615_v26 }
 0x1f6   : > { %v759_v7 = vpop.permute.xlu0 %758 }
 0x1f7   : > { %v738_v37 = vpop.permute.xlu1 %737 }
 0x1f8   : > { %v743_v30 = vadd.f32 %v738_v37, %v722_v34 }
 0x1fa   : > { %v764_v6 = vadd.f32 %v759_v7, %v743_v30 }
 0x1fc   : > { %v768_v50 = vadd.f32 %v767_v20, %v764_v6 }
 0x1fe   : > { %v926_v0 = vmax.f32 %v924_v52, %v768_v50  ;;  %v894_v41 = vpop.permute.xlu0 %893 }
 0x1ff   : > { %v761_v16 = vpop.permute.xlu1 %760  ;;  %v898_v8 = vadd.f32 %v894_v41, %v877_v33 }
 0x200   : > { %v765_v19 = vadd.f32 %v761_v16, %v744_v58 }
 0x201   : > { %v919_v39 = vadd.f32 %v915_v59, %v898_v8 }
 0x202   : > { %v769_v43 = vadd.f32 %v767_v20, %v765_v19 }
 0x203   : > { %v923_v9 = vadd.f32 %v921_v47, %v919_v39 }
 0x204   : > { %v927_v60 = vmax.f32 %v925_v18, %v769_v43 }
 0x206   : > { %v929_v22 = vmax.f32 %v927_v60, %v923_v9 }
 0x207   : > { %v913_v55 = vpop.permute.xlu1 %912 }
 0x208   : > { %v918_v12 = vadd.f32 %v913_v55, %v897_v40  ;;  %v931_v5 = vsub.f32 %v461_v28, %v929_v22  ;;  %v937_v46 = vsub.f32 %v615_v26, %v929_v22  ;;  %v943_v13 = vsub.f32 %v769_v43, %v929_v22 }
 0x209   : > { %v949_v15 = vsub.f32 %v923_v9, %v929_v22 }
 0x20a   : > { %v922_v11 = vadd.f32 %v921_v47, %v918_v12  ;;  %v934_v24 = vmul.f32 1.442695, %v931_v5  ;;  %v940_v56 = vmul.f32 1.442695, %v937_v46  ;;  %v946_v10 = vmul.f32 1.442695, %v943_v13 }
 0x20b   : > { %v952_v51 = vmul.f32 1.442695, %v949_v15 }
 0x20c   : > { %v928_v36 = vmax.f32 %v926_v0, %v922_v11  ;;  %1302 = vpow2.f32 %v934_v24 }
 0x20d   : > { %1304 = vpow2.f32 %v940_v56 }
 0x20e   : > { %v930_v34 = vsub.f32 %v460_v53, %v928_v36  ;;  %v936_v14 = vsub.f32 %v614_v61, %v928_v36  ;;  %v942_v48 = vsub.f32 %v768_v50, %v928_v36  ;;  %1306 = vpow2.f32 %v946_v10 }
 0x20f   : > { %v948_v45 = vsub.f32 %v922_v11, %v928_v36  ;;  %1308 = vpow2.f32 %v952_v51 }
 0x210   : > { %v932_v27 = vmul.f32 1.442695, %v930_v34  ;;  %v938_v42 = vmul.f32 1.442695, %v936_v14  ;;  %v944_v3 = vmul.f32 1.442695, %v942_v48 }
 0x211   : > { %v950_v32 = vmul.f32 1.442695, %v948_v45 }
 0x212   : > { %v1303_v1 = vpop.eup %1302  ;;  %1310 = vpow2.f32 %v932_v27 }
 0x213   : > { %v1305_v44 = vpop.eup %1304  ;;  %1312 = vpow2.f32 %v938_v42 }
 0x214   : > { %v955_v2 = vadd.f32 %v1305_v44, %v1303_v1  ;;  %v1307_v38 = vpop.eup %1306  ;;  %1314 = vpow2.f32 %v944_v3 }
 0x215   : > { %v1309_v25 = vpop.eup %1308  ;;  %1316 = vpow2.f32 %v950_v32 }
 0x216   : > { %v957_v54 = vadd.f32 %v1307_v38, %v955_v2 }
 0x218   : > { %v1311_v62 = vpop.eup %1310  ;;  %v959_v29 = vadd.f32 %v1309_v25, %v957_v54 }
 0x219   : > { %v1313_v4 = vpop.eup %1312 }
 0x21a   : > { %v954_v53 = vadd.f32 %v1313_v4, %v1311_v62  ;;  %1318 = vrcp.f32 %v959_v29  ;;  %v1315_v49 = vpop.eup %1314  ;;  %v986_v21 = vand.u32 2147483648, %v959_v29  ;;  %v984_v28 = vand.u32 2147483647, %v959_v29 }
 0x21b   : > { %v1317_v35 = vpop.eup %1316  ;;  %vm980_vm9 = vweird.f32 %v959_v29 }
 0x21c   : > { %v956_v61 = vadd.f32 %v1315_v49, %v954_v53  ;;  %v987_v23 = vor.u32 1.1754944e-38, %v986_v21  ;;  %vm985_vm11 = vcmp.eq.f32.partialorder %v984_v28, 8.507059e+37 }
 0x21e   : > { %v958_v31 = vadd.f32 %v1317_v35, %v956_v61 }
 0x220   : > { %v1319_v57 = vpop.eup %1318  ;;  %1320 = vrcp.f32 %v958_v31  ;;  %v969_v30 = vand.u32 2147483647, %v958_v31  ;;  %v971_v20 = vand.u32 2147483648, %v958_v31  ;;  %vm965_vm13 = vweird.f32 %v958_v31 }
 0x221   : > { %v976_v52 = vmul.f32 %v1319_v57, %v959_v29  ;;  %vm981_vm8 = vweird.f32 %v1319_v57 }
 0x222   : > { %vm982_vm10 = vmor %vm980_vm9, %vm981_vm8  ;;  %v972_v59 = vor.u32 1.1754944e-38, %v971_v20  ;;  %vm970_vm15 = vcmp.eq.f32.partialorder %v969_v30, 8.507059e+37 }
 0x223   : > { %v977_v63 = vsub.f32 1.0, %v976_v52 }
 0x225   : > { %v978_v17 = vmul.f32 %v1319_v57, %v977_v63 }
 0x226   : > { %v1321_v26 = vpop.eup %1320 }
 0x227   : > { %v961_v33 = vmul.f32 %v1321_v26, %v958_v31  ;;  %v979_v18 = vadd.f32 %v1319_v57, %v978_v17  ;;  %vm966_vm12 = vweird.f32 %v1321_v26 }
 0x228   : > { %vm967_vm14 = vmor %vm965_vm13, %vm966_vm12 }
 0x229   : > { %v962_v7 = vsub.f32 1.0, %v961_v33  ;;  %v983_v37 = vsel %vm982_vm10, %v1319_v57, %v979_v18 }
 0x22a   : > { %v988_v6 = vsel %vm985_vm11, %v987_v23, %v983_v37 }
 0x22b   : > { %v963_v50 = vmul.f32 %v1321_v26, %v962_v7  ;;  %v991_v0 = vmul.f32 %v1303_v1, %v988_v6  ;;  %v995_v58 = vmul.f32 %v1305_v44, %v988_v6  ;;  %v1000_v41 = vmul.f32 %v1307_v38, %v988_v6 }
 0x22c   : > { %v1005_v16 = vmul.f32 %v1309_v25, %v988_v6 }
 0x22d   : > { %v964_v8 = vadd.f32 %v1321_v26, %v963_v50  ;;  %993 = vst.msk [vmem:[%s228_s7 + $0x8] sm:$0xff] %vm288_vm7, %v991_v0 }
 0x22e   : > { %1214 = vst.msk [vmem:[%s228_s7 + $0x18] sm:$0xff] %vm288_vm7, %v995_v58 }
 0x22f   : > { %v968_v19 = vsel %vm967_vm14, %v1321_v26, %v964_v8  ;;  %1216 = vst.msk [vmem:[%s228_s7 + $0x28] sm:$0xff] %vm288_vm7, %v1000_v41 }
 0x230   : > { %v973_v47 = vsel %vm970_vm15, %v972_v59, %v968_v19  ;;  %1218 = vst.msk [vmem:[%s228_s7 + $0x38] sm:$0xff] %vm288_vm7, %v1005_v16 }
 0x231   : > { %v990_v39 = vmul.f32 %v1311_v62, %v973_v47  ;;  %v994_v43 = vmul.f32 %v1313_v4, %v973_v47  ;;  %v999_v9 = vmul.f32 %v1315_v49, %v973_v47  ;;  %v1004_v60 = vmul.f32 %v1317_v35, %v973_v47 }
 0x233   : > { %992 = vst.msk [vmem:[%s228_s7] sm:$0xff] %vm288_vm7, %v990_v39 }
 0x234   : > { %1213 = vst.msk [vmem:[%s228_s7 + $0x10] sm:$0xff] %vm288_vm7, %v994_v43 }
 0x235   : > { %1215 = vst.msk [vmem:[%s228_s7 + $0x20] sm:$0xff] %vm288_vm7, %v999_v9 }
 0x236   : > { %1217 = vst.msk [vmem:[%s228_s7 + $0x30] sm:$0xff] %vm288_vm7, %v1004_v60 }
 0x237   : > { %1407 = shalt.err (!%p1404_p1)
}
 0x238   : > { %1239 = dma.vmem_to_hbm [thread:$0]  (%p1528_p5), %s1045_s19, 1024, %s1047_s9, %s1015_s10, %s1463_s24, %s1463_s24, %s1464_s26  }
 0x239 PF: > { %s2261_s15 = sld [smem:[#allocation15_spill]]  ;;  %p1260_p2 = scmp.ge.s32.totalorder %s1454_s18, 2 }
 0x23b   : > { %p1250_p3 = pnand %p1260_p2, %p1532_p6 }
 0x23d   : > { %p1251_p4 = pneg %p1250_p3 }
 0x23f   : > { %s1061_s17 = sand.u32 1, %s2261_s15  }
 0x240   : > { %s1062_s21 = scalar_lea.sflag [#allocation4], %s1061_s17 }
 0x241   : > { %1433 = dma.done.wait (%p1251_p4), %s1062_s21, 256  }
 0x242   : > { %1435 = vsyncadd (%p1251_p4), %s1062_s21, 4294967040  ;;  %s1072_s20 = scalar_lea.sflag [#allocation10], %s1061_s17 }
 0x243   : > { %1437 = dma.done.wait (%p1251_p4), %s1072_s20, 1024  }
 0x244   : > { %1439 = vsyncadd (%p1251_p4), %s1072_s20, 4294966272  ;;  %s2263_s18 = sld [smem:[#allocation17_spill]]  ;;  %s2266_s15 = smov %s1446_s16 }
 0x245   : > { %s2264_s25 = sld [smem:[#allocation16_spill]] }
 0x246   : > { %s2265_s17 = sld [smem:[#allocation18_spill]] }
 0x24a   : > { %p20_p5 = scmp.ge.s32.totalorder %s2263_s18, 4  }
 0x24b   : > { %s2267_s16 = smov %s2264_s25 }
 0x24c   :  { %22 = sbr.rel (!%p20_p5) target bundleno = 11 (0xb), region = 96 }
 0x251   :  { %1078 = vsyncpa [#allocation4], 1 }
 0x252   :  { %1080 = vsyncpa [#allocation4 + $0x1], 1 }
 0x253   :  { %1081 = vsyncpa [#allocation10], 1 }
 0x254   :  { %1083 = vsyncpa [#allocation10 + $0x1], 1 }
 0x255   :  { %1084 = vsyncpa [#allocation5], 1 }
 0x256   :  { %1086 = vsyncpa [#allocation5 + $0x1], 1 }
 0x257   :  { %1087 = vsyncpa [#allocation7], 1 }

</bundles_post_ra>
